<compile_context>
chip_gen: v7x
topology: tpu7x:2x2x1
jax: 0.10.0
libtpu: 0.0.40
codegen_flags: <defaults>
</compile_context>

<pallas_src>
import functools

import jax
import jax.numpy as jnp
from jax import lax
from jax.experimental import pallas as pl
from jax.experimental.pallas import tpu as pltpu

_EPS = 1e-5
_LANE = 128


def _round_up(x, m):
    return (x + m - 1) // m * m


def _vmem_limit_bytes():
    """Generation-aware scoped-VMEM limit (leaves headroom for Mosaic scratch)."""
    cap = 128 * 1024 * 1024
    try:
        info = pltpu.get_tpu_info()
        cap = int(getattr(info, "vmem_capacity_bytes", cap) or cap)
    except Exception:
        pass
    # ~45% of physical VMEM: 57 MiB on v5e/v6e, ~28 MiB on v7x.
    return min(int(cap * 0.45), 96 * 1024 * 1024)


def _col_ds(start, size, stride):
    return pl.ds(start, size) if stride == 1 else pl.ds(start, size, stride=stride)


def _dw_row(x_ref, wdw, row0, ncols, col_stride, cp):
    """One depthwise-conv output row.

    The 9 shifted (ncols, C) windows are read straight from the VMEM ref via
    pl.ds (load-unit slices), so only the f32 accumulator stays live — no
    sublane-shifted value copies, no vreg spills.
    """
    acc = jnp.zeros((ncols, cp), jnp.float32)
    for di in range(3):
        for dj in range(3):
            win = x_ref[0, pl.ds(row0 + di, 1), _col_ds(dj, ncols, col_stride), :][0]
            acc = acc + win.astype(jnp.float32) * wdw[3 * di + dj]
    return acc


# ---------------- pass A: depthwise 3x3 + bias -> BN1 sum/sumsq only ----------------
def _bn1_stats_kernel(x_ref, wdw_ref, bdw_ref, stats_ref, sum_sc, sq_sc, *, stride):
    # x_ref:     (1, H, W, Cp)   one image, channel-padded NHWC
    # stats_ref: (1, 2, Cp)      per-image [sum, sumsq] of y = dwconv(x) + bias
    # y itself is never written to HBM (pass B recomputes it).
    _, H, W, Cp = x_ref.shape
    s = stride
    Ho = (H - 3) // s + 1
    Wo = (W - 3) // s + 1

    wdw = wdw_ref[...].astype(jnp.float32)     # (9, Cp), hoisted out of the loop
    bias = bdw_ref[...].astype(jnp.float32)    # (1, Cp)

    sum_sc[...] = jnp.zeros_like(sum_sc)
    sq_sc[...] = jnp.zeros_like(sq_sc)

    @pl.loop(0, Ho)
    def _(i):
        row = _dw_row(x_ref, wdw, i * s, Wo, s, Cp) + bias       # (Wo, Cp)
        sum_sc[...] += row                                       # element-wise accumulate;
        sq_sc[...] += row * row                                  # reduce sublanes once at end

    stats_ref[...] = jnp.concatenate(
        [jnp.sum(sum_sc[...], axis=0, keepdims=True),
         jnp.sum(sq_sc[...], axis=0, keepdims=True)], axis=0).reshape(1, 2, Cp)


# ------- pass B: recompute dwconv row + BN1 + ReLU + 1x1 MXU conv + BN2 stats -------
def _fused_dw_pw_kernel(x_ref, wdw_ref, bdw_ref, scale1_ref, shift1_ref,
                        wpw_ref, bpw_ref, z_ref, stats_ref, sum_sc, sq_sc,
                        *, stride, matmul_dtype):
    _, H, W, Cpi = x_ref.shape
    _, Ho2, Wo2, Cpo = z_ref.shape
    s = stride
    s2 = s * s   # the stride-s 1x1 conv subsamples the stride-s depthwise output

    wdw = wdw_ref[...].astype(jnp.float32)                        # (9, Cpi)
    scale1 = scale1_ref[...]                                      # (1, Cpi)
    # Fold the depthwise bias into the BN1 shift: (y+b)*g + t == y*g + (t + b*g).
    shift1 = shift1_ref[...] + bdw_ref[...] * scale1
    wpw = wpw_ref[...].astype(matmul_dtype)                       # (Cpi, Cpo)
    bpw = bpw_ref[...].astype(jnp.float32)                        # (1, Cpo)

    sum_sc[...] = jnp.zeros_like(sum_sc)
    sq_sc[...] = jnp.zeros_like(sq_sc)

    @pl.loop(0, Ho2)
    def _(i2):
        acc = _dw_row(x_ref, wdw, i2 * s2, Wo2, s2, Cpi)          # (Wo2, Cpi)
        a = jnp.maximum(acc * scale1 + shift1, 0.0)               # BN1 + ReLU
        z = jnp.dot(a.astype(matmul_dtype), wpw,
                    preferred_element_type=jnp.float32) + bpw     # (Wo2, Cpo), f32 acc
        z_ref[0, pl.ds(i2, 1), :, :] = z[None].astype(z_ref.dtype)
        sum_sc[...] += z                                          # f32 stats before downcast
        sq_sc[...] += z * z

    stats_ref[...] = jnp.concatenate(
        [jnp.sum(sum_sc[...], axis=0, keepdims=True),
         jnp.sum(sq_sc[...], axis=0, keepdims=True)], axis=0).reshape(1, 2, Cpo)


# ---------------- pass C: BN2 affine + ReLU (+ fused channel un-pad) ----------------
def _bn2_act_kernel(z_ref, scale2_ref, shift2_ref, o_ref):
    cout = o_ref.shape[-1]
    z = z_ref[...].astype(jnp.float32)
    y = jnp.maximum(z * scale2_ref[...] + shift2_ref[...], 0.0)
    o_ref[...] = y[..., :cout].astype(o_ref.dtype)


def _bn_scale_shift(stats, count, gamma, beta):
    """stats: (N, 2, C) per-image [sum, sumsq] -> global BN affine scale/shift."""
    tot = jnp.sum(stats, axis=0)                            # (2, C)
    mean = tot[0] / count
    var = jnp.maximum(tot[1] / count - mean * mean, 0.0)     # biased, training-mode
    scale = gamma * lax.rsqrt(var + _EPS)                    # (1, C)
    shift = beta - mean * scale
    return scale, shift


@functools.partial(jax.jit, static_argnames=("stride", "use_bf16"))
def depthwise_conv_block_nhwc(x_nhwc, params, *, stride=1, use_bf16=False):
    """NHWC-native forward (preferred entry point for an NHWC model)."""
    N, H, W, Cin = x_nhwc.shape
    Cout = params["w_pw"].shape[0]
    s = stride
    assert H >= 3 and W >= 3 and s >= 1
    Ho, Wo = (H - 3) // s + 1, (W - 3) // s + 1
    Ho2, Wo2 = (Ho - 1) // s + 1, (Wo - 1) // s + 1
    M = Ho2 * Wo2
    Cpi, Cpo = _round_up(Cin, _LANE), _round_up(Cout, _LANE)
    f32 = jnp.float32
    mm_dtype = jnp.bfloat16 if use_bf16 else f32
    act_dtype = jnp.bfloat16 if use_bf16 else f32
    act_bytes = 2 if use_bf16 else 4
    mm_bytes = 2 if use_bf16 else 4

    # Lane-dense (128-padded) operands; zero padding keeps padded channels 0
    # through both BNs and the matmul.
    x_p = jnp.pad(x_nhwc.astype(f32), ((0, 0), (0, 0), (0, 0), (0, Cpi - Cin)))
    wdw = jnp.pad(jnp.transpose(params["w_dw"][:, 0, :, :], (1, 2, 0)).reshape(9, Cin),
                  ((0, 0), (0, Cpi - Cin))).astype(f32)
    bdw = jnp.pad(params["b_dw"].reshape(1, Cin), ((0, 0), (0, Cpi - Cin))).astype(f32)
    g1 = jnp.pad(params["bn1_gamma"].reshape(1, Cin), ((0, 0), (0, Cpi - Cin))).astype(f32)
    be1 = jnp.pad(params["bn1_beta"].reshape(1, Cin), ((0, 0), (0, Cpi - Cin))).astype(f32)
    wpw = jnp.pad(jnp.transpose(params["w_pw"][:, :, 0, 0], (1, 0)),
                  ((0, Cpi - Cin), (0, Cpo - Cout))).astype(mm_dtype)
    bpw = jnp.pad(params["b_pw"].reshape(1, Cout), ((0, 0), (0, Cpo - Cout))).astype(f32)
    g2 = jnp.pad(params["bn2_gamma"].reshape(1, Cout), ((0, 0), (0, Cpo - Cout))).astype(f32)
    be2 = jnp.pad(params["bn2_beta"].reshape(1, Cout), ((0, 0), (0, Cpo - Cout))).astype(f32)

    cparams = pltpu.CompilerParams(dimension_semantics=("parallel",),
                                   vmem_limit_bytes=_vmem_limit_bytes())

    # ---- pass A: depthwise conv + bias -> BN1 sum/sumsq only (no y to HBM) ----
    stats1 = pl.pallas_call(
        functools.partial(_bn1_stats_kernel, stride=s),
        grid=(N,),
        in_specs=[
            pl.BlockSpec((1, H, W, Cpi), lambda n: (n, 0, 0, 0)),
            pl.BlockSpec((9, Cpi), lambda n: (0, 0)),
            pl.BlockSpec((1, Cpi), lambda n: (0, 0)),
        ],
        out_specs=pl.BlockSpec((1, 2, Cpi), lambda n: (n, 0, 0)),
        out_shape=jax.ShapeDtypeStruct((N, 2, Cpi), f32),
        scratch_shapes=[pltpu.VMEM((Wo, Cpi), f32), pltpu.VMEM((Wo, Cpi), f32)],
        compiler_params=cparams,
        cost_estimate=pl.CostEstimate(
            flops=2 * 9 * N * Ho * Wo * Cpi + 4 * N * Ho * Wo * Cpi,
            transcendentals=0,
            bytes_accessed=4 * (N * H * W * Cpi + N * 2 * Cpi + 10 * Cpi)),
    )(x_p, wdw, bdw)

    scale1, shift1 = _bn_scale_shift(stats1, N * Ho * Wo, g1, be1)

    # ---- pass B: recompute dwconv rows + BN1 + ReLU + 1x1 MXU conv + BN2 stats ----
    z_pre, stats2 = pl.pallas_call(
        functools.partial(_fused_dw_pw_kernel, stride=s, matmul_dtype=mm_dtype),
        grid=(N,),
        in_specs=[
            pl.BlockSpec((1, H, W, Cpi), lambda n: (n, 0, 0, 0)),
            pl.BlockSpec((9, Cpi), lambda n: (0, 0)),
            pl.BlockSpec((1, Cpi), lambda n: (0, 0)),
            pl.BlockSpec((1, Cpi), lambda n: (0, 0)),
            pl.BlockSpec((1, Cpi), lambda n: (0, 0)),
            pl.BlockSpec((Cpi, Cpo), lambda n: (0, 0)),
            pl.BlockSpec((1, Cpo), lambda n: (0, 0)),
        ],
        out_specs=(
            pl.BlockSpec((1, Ho2, Wo2, Cpo), lambda n: (n, 0, 0, 0)),
            pl.BlockSpec((1, 2, Cpo), lambda n: (n, 0, 0)),
        ),
        out_shape=(
            jax.ShapeDtypeStruct((N, Ho2, Wo2, Cpo), act_dtype),
            jax.ShapeDtypeStruct((N, 2, Cpo), f32),
        ),
        scratch_shapes=[pltpu.VMEM((Wo2, Cpo), f32), pltpu.VMEM((Wo2, Cpo), f32)],
        compiler_params=cparams,
        cost_estimate=pl.CostEstimate(
            flops=2 * 9 * N * Ho2 * Wo2 * Cpi + 2 * N * M * Cpi * Cpo,
            transcendentals=0,
            bytes_accessed=(4 * N * H * W * Cpi + act_bytes * N * M * Cpo
                            + mm_bytes * Cpi * Cpo
                            + 4 * (N * 2 * Cpo + 13 * Cpi + Cpo))),
    )(x_p, wdw, bdw, scale1, shift1, wpw, bpw)

    scale2, shift2 = _bn_scale_shift(stats2, N * M, g2, be2)

    # ---- pass C: BN2 affine + ReLU (+ fused channel un-pad when lane-dense) ----
    fuse_unpad = (Cout % _LANE == 0)
    out_c = Cout if fuse_unpad else Cpo
    out = pl.pallas_call(
        _bn2_act_kernel,
        grid=(N,),
        in_specs=[
            pl.BlockSpec((1, Ho2, Wo2, Cpo), lambda n: (n, 0, 0, 0)),
            pl.BlockSpec((1, Cpo), lambda n: (0, 0)),
            pl.BlockSpec((1, Cpo), lambda n: (0, 0)),
        ],
        out_specs=pl.BlockSpec((1, Ho2, Wo2, out_c), lambda n: (n, 0, 0, 0)),
        out_shape=jax.ShapeDtypeStruct((N, Ho2, Wo2, out_c), x_nhwc.dtype),
        compiler_params=cparams,
        cost_estimate=pl.CostEstimate(
            flops=3 * N * M * Cpo, transcendentals=0,
            bytes_accessed=(act_bytes * N * M * Cpo
                            + x_nhwc.dtype.itemsize * N * M * out_c + 8 * Cpo)),
    )(z_pre, scale2, shift2)

    if not fuse_unpad:
        out = out[:, :, :, :Cout]   # Cout < 128: keep lane-dense stores in-kernel
    return out


@functools.partial(jax.jit, static_argnames=("stride", "use_bf16"))
def depthwise_conv_block(x_nchw, params, *, stride=1, use_bf16=False):
    """PyTorch-compatible NCHW interface."""
    # TODO(synk): in an end-to-end NHWC model these edge transposes disappear;
    # they exist only to match the PyTorch NCHW I/O contract.
    x_nhwc = jnp.transpose(x_nchw, (0, 2, 3, 1))
    out_nhwc = depthwise_conv_block_nhwc(x_nhwc, params, stride=stride,
                                         use_bf16=use_bf16)
    return jnp.transpose(out_nhwc, (0, 3, 1, 2))


# ---------------- pure-JAX reference (PyTorch training-mode forward) ----------------
def reference_forward(x_nchw, params, *, stride=1):
    eps = _EPS
    Cin = x_nchw.shape[1]

    y = lax.conv_general_dilated(
        x_nchw, params["w_dw"], (stride, stride), "VALID",
        dimension_numbers=("NCHW", "OIHW", "NCHW"), feature_group_count=Cin)
    y = y + params["b_dw"][None, :, None, None]
    m = y.mean(axis=(0, 2, 3), keepdims=True)
    v = ((y - m) ** 2).mean(axis=(0, 2, 3), keepdims=True)
    y = (y - m) * lax.rsqrt(v + eps)
    y = y * params["bn1_gamma"][None, :, None, None] + params["bn1_beta"][None, :, None, None]
    y = jnp.maximum(y, 0.0)

    z = lax.conv_general_dilated(
        y, params["w_pw"], (stride, stride), "VALID",
        dimension_numbers=("NCHW", "OIHW", "NCHW"))
    z = z + params["b_pw"][None, :, None, None]
    m = z.mean(axis=(0, 2, 3), keepdims=True)
    v = ((z - m) ** 2).mean(axis=(0, 2, 3), keepdims=True)
    z = (z - m) * lax.rsqrt(v + eps)
    z = z * params["bn2_gamma"][None, :, None, None] + params["bn2_beta"][None, :, None, None]
    return jnp.maximum(z, 0.0)


def init_params(key, in_channel, out_channel):
    ks = jax.random.split(key, 6)
    return {
        "w_dw": 0.1 * jax.random.normal(ks[0], (in_channel, 1, 3, 3), jnp.float32),
        "b_dw": 0.1 * jax.random.normal(ks[1], (in_channel,), jnp.float32),
        "bn1_gamma": 1.0 + 0.1 * jax.random.normal(ks[2], (in_channel,), jnp.float32),
        "bn1_beta": 0.1 * jax.random.normal(ks[3], (in_channel,), jnp.float32),
        "w_pw": 0.1 * jax.random.normal(ks[4], (out_channel, in_channel, 1, 1), jnp.float32),
        "b_pw": 0.1 * jax.random.normal(ks[5], (out_channel,), jnp.float32),
        "bn2_gamma": jnp.linspace(0.9, 1.1, out_channel, dtype=jnp.float32),
        "bn2_beta": jnp.linspace(-0.1, 0.1, out_channel, dtype=jnp.float32),
    }


if __name__ == "__main__":
    key = jax.random.PRNGKey(0)
    kx, kp = jax.random.split(key)

    N, Cin, Cout, H, W = 2, 4, 8, 16, 16
    stride = 1  # module default

    x = jax.random.normal(kx, (N, Cin, H, W), jnp.float32)
    params = init_params(kp, Cin, Cout)

    # Strict f32 check against the PyTorch-style training-mode reference.
    out = jax.block_until_ready(depthwise_conv_block(x, params, stride=stride))
    ref = reference_forward(x, params, stride=stride)
    assert out.shape == ref.shape, (out.shape, ref.shape)
    err = float(jnp.max(jnp.abs(out - ref)))
    assert jnp.allclose(out, ref, rtol=1e-4, atol=1e-4), err

    # bf16 MXU operands + bf16 inter-pass activation (recommended on v6e/v7x);
    # BN statistics stay f32, so only a loose tolerance vs. the f32 reference.
    out_bf16 = jax.block_until_ready(
        depthwise_conv_block(x, params, stride=stride, use_bf16=True))
    err_bf16 = float(jnp.max(jnp.abs(out_bf16 - ref)))
    assert jnp.allclose(out_bf16, ref, rtol=1e-1, atol=1e-1), err_bf16

    print("KERNEL_OK")
</pallas_src>

<mosaic_0001>
module attributes {stable_mosaic.version = 11 : i64} {
  func.func @_bn1_stats_kernel(%arg0: i32, %arg1: memref<1x16x16x128xf32, #tpu.memory_space<vmem>>, %arg2: memref<9x128xf32, #tpu.memory_space<vmem>>, %arg3: memref<1x128xf32, #tpu.memory_space<vmem>>, %arg4: memref<1x2x128xf32, #tpu.memory_space<vmem>>, %arg5: memref<14x128xf32, #tpu.memory_space<vmem>>, %arg6: memref<14x128xf32, #tpu.memory_space<vmem>>) attributes {dimension_semantics = [#tpu.dimension_semantics<parallel>], iteration_bounds = array<i64: 2>, scalar_prefetch = 0 : i64, scratch_operands = 2 : i64, tpu.core_type = #tpu.core_type<tc>, window_params = [{transform_indices = @transform_0, window_bounds = array<i64: 1, 16, 16, 128>}, {pipeline_mode = #tpu.pipeline_mode<synchronous>, transform_indices = @transform_1, window_bounds = array<i64: 9, 128>}, {pipeline_mode = #tpu.pipeline_mode<synchronous>, transform_indices = @transform_2, window_bounds = array<i64: 1, 128>}, {transform_indices = @transform_3, window_bounds = array<i64: 1, 2, 128>}]} {
    %c0 = arith.constant 0 : index
    %c0_0 = arith.constant 0 : index
    %0 = vector.load %arg2[%c0, %c0_0] : memref<9x128xf32, #tpu.memory_space<vmem>>, vector<9x128xf32>
    %c0_1 = arith.constant 0 : index
    %c0_2 = arith.constant 0 : index
    %1 = vector.load %arg3[%c0_1, %c0_2] : memref<1x128xf32, #tpu.memory_space<vmem>>, vector<1x128xf32>
    %cst = arith.constant 0.000000e+00 : f32
    %2 = vector.broadcast %cst : f32 to vector<14x128xf32>
    %c0_3 = arith.constant 0 : index
    %c0_4 = arith.constant 0 : index
    %3 = vector.load %arg5[%c0_3, %c0_4] : memref<14x128xf32, #tpu.memory_space<vmem>>, vector<14x128xf32>
    tpu.vector_store %arg5[%c0_3, %c0_4], %2 {strides = array<i32>} : memref<14x128xf32, #tpu.memory_space<vmem>>, vector<14x128xf32>,
    %cst_5 = arith.constant 0.000000e+00 : f32
    %4 = vector.broadcast %cst_5 : f32 to vector<14x128xf32>
    %c0_6 = arith.constant 0 : index
    %c0_7 = arith.constant 0 : index
    %5 = vector.load %arg6[%c0_6, %c0_7] : memref<14x128xf32, #tpu.memory_space<vmem>>, vector<14x128xf32>
    tpu.vector_store %arg6[%c0_6, %c0_7], %4 {strides = array<i32>} : memref<14x128xf32, #tpu.memory_space<vmem>>, vector<14x128xf32>,
    %c0_i32 = arith.constant 0 : i32
    %c14_i32 = arith.constant 14 : i32
    %6 = arith.addi %c0_i32, %c14_i32 : i32
    %c1_i32 = arith.constant 1 : i32
    scf.for %arg7 = %c0_i32 to %6 step %c1_i32  : i32 {
      %c1_i32_18 = arith.constant 1 : i32
      %16 = arith.muli %arg7, %c1_i32_18 : i32
      %c0_i32_19 = arith.constant 0 : i32
      %17 = arith.addi %c0_i32_19, %16 : i32
      %c1_i32_20 = arith.constant 1 : i32
      %18 = arith.muli %17, %c1_i32_20 : i32
      %cst_21 = arith.constant 0.000000e+00 : f32
      %19 = vector.broadcast %cst_21 : f32 to vector<14x128xf32>
      %c0_i32_22 = arith.constant 0 : i32
      %20 = arith.addi %18, %c0_i32_22 : i32
      %c0_23 = arith.constant 0 : index
      %21 = arith.index_cast %20 : i32 to index
      %c0_24 = arith.constant 0 : index
      %c0_25 = arith.constant 0 : index
      %22 = vector.load %arg1[%c0_23, %21, %c0_24, %c0_25] : memref<1x16x16x128xf32, #tpu.memory_space<vmem>>, vector<1x1x14x128xf32>
      %23 = vector.shape_cast %22 : vector<1x1x14x128xf32> to vector<1x14x128xf32>
      %24 = vector.shape_cast %23 : vector<1x14x128xf32> to vector<14x128xf32>
      %25 = vector.extract_strided_slice %0 {offsets = [0, 0], sizes = [1, 128], strides = [1, 1]} : vector<9x128xf32> to vector<1x128xf32>
      %26 = vector.shape_cast %25 : vector<1x128xf32> to vector<128xf32>
      %27 = vector.shape_cast %26 : vector<128xf32> to vector<1x128xf32>
      %28 = vector.broadcast %27 : vector<1x128xf32> to vector<14x128xf32>
      %29 = arith.mulf %24, %28 : vector<14x128xf32>
      %30 = arith.addf %19, %29 : vector<14x128xf32>
      %c0_i32_26 = arith.constant 0 : i32
      %31 = arith.addi %18, %c0_i32_26 : i32
      %c0_27 = arith.constant 0 : index
      %32 = arith.index_cast %31 : i32 to index
      %c1 = arith.constant 1 : index
      %c0_28 = arith.constant 0 : index
      %33 = vector.load %arg1[%c0_27, %32, %c1, %c0_28] : memref<1x16x16x128xf32, #tpu.memory_space<vmem>>, vector<1x1x14x128xf32>
      %34 = vector.shape_cast %33 : vector<1x1x14x128xf32> to vector<1x14x128xf32>
      %35 = vector.shape_cast %34 : vector<1x14x128xf32> to vector<14x128xf32>
      %36 = vector.extract_strided_slice %0 {offsets = [1, 0], sizes = [1, 128], strides = [1, 1]} : vector<9x128xf32> to vector<1x128xf32>
      %37 = vector.shape_cast %36 : vector<1x128xf32> to vector<128xf32>
      %38 = vector.shape_cast %37 : vector<128xf32> to vector<1x128xf32>
      %39 = vector.broadcast %38 : vector<1x128xf32> to vector<14x128xf32>
      %40 = arith.mulf %35, %39 : vector<14x128xf32>
      %41 = arith.addf %30, %40 : vector<14x128xf32>
      %c0_i32_29 = arith.constant 0 : i32
      %42 = arith.addi %18, %c0_i32_29 : i32
      %c0_30 = arith.constant 0 : index
      %43 = arith.index_cast %42 : i32 to index
      %c2 = arith.constant 2 : index
      %c0_31 = arith.constant 0 : index
      %44 = vector.load %arg1[%c0_30, %43, %c2, %c0_31] : memref<1x16x16x128xf32, #tpu.memory_space<vmem>>, vector<1x1x14x128xf32>
      %45 = vector.shape_cast %44 : vector<1x1x14x128xf32> to vector<1x14x128xf32>
      %46 = vector.shape_cast %45 : vector<1x14x128xf32> to vector<14x128xf32>
      %47 = vector.extract_strided_slice %0 {offsets = [2, 0], sizes = [1, 128], strides = [1, 1]} : vector<9x128xf32> to vector<1x128xf32>
      %48 = vector.shape_cast %47 : vector<1x128xf32> to vector<128xf32>
      %49 = vector.shape_cast %48 : vector<128xf32> to vector<1x128xf32>
      %50 = vector.broadcast %49 : vector<1x128xf32> to vector<14x128xf32>
      %51 = arith.mulf %46, %50 : vector<14x128xf32>
      %52 = arith.addf %41, %51 : vector<14x128xf32>
      %c1_i32_32 = arith.constant 1 : i32
      %53 = arith.addi %18, %c1_i32_32 : i32
      %c0_33 = arith.constant 0 : index
      %54 = arith.index_cast %53 : i32 to index
      %c0_34 = arith.constant 0 : index
      %c0_35 = arith.constant 0 : index
      %55 = vector.load %arg1[%c0_33, %54, %c0_34, %c0_35] : memref<1x16x16x128xf32, #tpu.memory_space<vmem>>, vector<1x1x14x128xf32>
      %56 = vector.shape_cast %55 : vector<1x1x14x128xf32> to vector<1x14x128xf32>
      %57 = vector.shape_cast %56 : vector<1x14x128xf32> to vector<14x128xf32>
      %58 = vector.extract_strided_slice %0 {offsets = [3, 0], sizes = [1, 128], strides = [1, 1]} : vector<9x128xf32> to vector<1x128xf32>
      %59 = vector.shape_cast %58 : vector<1x128xf32> to vector<128xf32>
      %60 = vector.shape_cast %59 : vector<128xf32> to vector<1x128xf32>
      %61 = vector.broadcast %60 : vector<1x128xf32> to vector<14x128xf32>
      %62 = arith.mulf %57, %61 : vector<14x128xf32>
      %63 = arith.addf %52, %62 : vector<14x128xf32>
      %c1_i32_36 = arith.constant 1 : i32
      %64 = arith.addi %18, %c1_i32_36 : i32
      %c0_37 = arith.constant 0 : index
      %65 = arith.index_cast %64 : i32 to index
      %c1_38 = arith.constant 1 : index
      %c0_39 = arith.constant 0 : index
      %66 = vector.load %arg1[%c0_37, %65, %c1_38, %c0_39] : memref<1x16x16x128xf32, #tpu.memory_space<vmem>>, vector<1x1x14x128xf32>
      %67 = vector.shape_cast %66 : vector<1x1x14x128xf32> to vector<1x14x128xf32>
      %68 = vector.shape_cast %67 : vector<1x14x128xf32> to vector<14x128xf32>
      %69 = vector.extract_strided_slice %0 {offsets = [4, 0], sizes = [1, 128], strides = [1, 1]} : vector<9x128xf32> to vector<1x128xf32>
      %70 = vector.shape_cast %69 : vector<1x128xf32> to vector<128xf32>
      %71 = vector.shape_cast %70 : vector<128xf32> to vector<1x128xf32>
      %72 = vector.broadcast %71 : vector<1x128xf32> to vector<14x128xf32>
      %73 = arith.mulf %68, %72 : vector<14x128xf32>
      %74 = arith.addf %63, %73 : vector<14x128xf32>
      %c1_i32_40 = arith.constant 1 : i32
      %75 = arith.addi %18, %c1_i32_40 : i32
      %c0_41 = arith.constant 0 : index
      %76 = arith.index_cast %75 : i32 to index
      %c2_42 = arith.constant 2 : index
      %c0_43 = arith.constant 0 : index
      %77 = vector.load %arg1[%c0_41, %76, %c2_42, %c0_43] : memref<1x16x16x128xf32, #tpu.memory_space<vmem>>, vector<1x1x14x128xf32>
      %78 = vector.shape_cast %77 : vector<1x1x14x128xf32> to vector<1x14x128xf32>
      %79 = vector.shape_cast %78 : vector<1x14x128xf32> to vector<14x128xf32>
      %80 = vector.extract_strided_slice %0 {offsets = [5, 0], sizes = [1, 128], strides = [1, 1]} : vector<9x128xf32> to vector<1x128xf32>
      %81 = vector.shape_cast %80 : vector<1x128xf32> to vector<128xf32>
      %82 = vector.shape_cast %81 : vector<128xf32> to vector<1x128xf32>
      %83 = vector.broadcast %82 : vector<1x128xf32> to vector<14x128xf32>
      %84 = arith.mulf %79, %83 : vector<14x128xf32>
      %85 = arith.addf %74, %84 : vector<14x128xf32>
      %c2_i32 = arith.constant 2 : i32
      %86 = arith.addi %18, %c2_i32 : i32
      %c0_44 = arith.constant 0 : index
      %87 = arith.index_cast %86 : i32 to index
      %c0_45 = arith.constant 0 : index
      %c0_46 = arith.constant 0 : index
      %88 = vector.load %arg1[%c0_44, %87, %c0_45, %c0_46] : memref<1x16x16x128xf32, #tpu.memory_space<vmem>>, vector<1x1x14x128xf32>
      %89 = vector.shape_cast %88 : vector<1x1x14x128xf32> to vector<1x14x128xf32>
      %90 = vector.shape_cast %89 : vector<1x14x128xf32> to vector<14x128xf32>
      %91 = vector.extract_strided_slice %0 {offsets = [6, 0], sizes = [1, 128], strides = [1, 1]} : vector<9x128xf32> to vector<1x128xf32>
      %92 = vector.shape_cast %91 : vector<1x128xf32> to vector<128xf32>
      %93 = vector.shape_cast %92 : vector<128xf32> to vector<1x128xf32>
      %94 = vector.broadcast %93 : vector<1x128xf32> to vector<14x128xf32>
      %95 = arith.mulf %90, %94 : vector<14x128xf32>
      %96 = arith.addf %85, %95 : vector<14x128xf32>
      %c2_i32_47 = arith.constant 2 : i32
      %97 = arith.addi %18, %c2_i32_47 : i32
      %c0_48 = arith.constant 0 : index
      %98 = arith.index_cast %97 : i32 to index
      %c1_49 = arith.constant 1 : index
      %c0_50 = arith.constant 0 : index
      %99 = vector.load %arg1[%c0_48, %98, %c1_49, %c0_50] : memref<1x16x16x128xf32, #tpu.memory_space<vmem>>, vector<1x1x14x128xf32>
      %100 = vector.shape_cast %99 : vector<1x1x14x128xf32> to vector<1x14x128xf32>
      %101 = vector.shape_cast %100 : vector<1x14x128xf32> to vector<14x128xf32>
      %102 = vector.extract_strided_slice %0 {offsets = [7, 0], sizes = [1, 128], strides = [1, 1]} : vector<9x128xf32> to vector<1x128xf32>
      %103 = vector.shape_cast %102 : vector<1x128xf32> to vector<128xf32>
      %104 = vector.shape_cast %103 : vector<128xf32> to vector<1x128xf32>
      %105 = vector.broadcast %104 : vector<1x128xf32> to vector<14x128xf32>
      %106 = arith.mulf %101, %105 : vector<14x128xf32>
      %107 = arith.addf %96, %106 : vector<14x128xf32>
      %c2_i32_51 = arith.constant 2 : i32
      %108 = arith.addi %18, %c2_i32_51 : i32
      %c0_52 = arith.constant 0 : index
      %109 = arith.index_cast %108 : i32 to index
      %c2_53 = arith.constant 2 : index
      %c0_54 = arith.constant 0 : index
      %110 = vector.load %arg1[%c0_52, %109, %c2_53, %c0_54] : memref<1x16x16x128xf32, #tpu.memory_space<vmem>>, vector<1x1x14x128xf32>
      %111 = vector.shape_cast %110 : vector<1x1x14x128xf32> to vector<1x14x128xf32>
      %112 = vector.shape_cast %111 : vector<1x14x128xf32> to vector<14x128xf32>
      %113 = vector.extract_strided_slice %0 {offsets = [8, 0], sizes = [1, 128], strides = [1, 1]} : vector<9x128xf32> to vector<1x128xf32>
      %114 = vector.shape_cast %113 : vector<1x128xf32> to vector<128xf32>
      %115 = vector.shape_cast %114 : vector<128xf32> to vector<1x128xf32>
      %116 = vector.broadcast %115 : vector<1x128xf32> to vector<14x128xf32>
      %117 = arith.mulf %112, %116 : vector<14x128xf32>
      %118 = arith.addf %107, %117 : vector<14x128xf32>
      %119 = vector.broadcast %1 : vector<1x128xf32> to vector<14x128xf32>
      %120 = arith.addf %118, %119 : vector<14x128xf32>
      %c0_55 = arith.constant 0 : index
      %c0_56 = arith.constant 0 : index
      %121 = vector.load %arg5[%c0_55, %c0_56] : memref<14x128xf32, #tpu.memory_space<vmem>>, vector<14x128xf32>
      %122 = arith.addf %121, %120 : vector<14x128xf32>
      %c0_57 = arith.constant 0 : index
      %c0_58 = arith.constant 0 : index
      %123 = vector.load %arg5[%c0_57, %c0_58] : memref<14x128xf32, #tpu.memory_space<vmem>>, vector<14x128xf32>
      tpu.vector_store %arg5[%c0_57, %c0_58], %122 {strides = array<i32>} : memref<14x128xf32, #tpu.memory_space<vmem>>, vector<14x128xf32>,
      %c0_59 = arith.constant 0 : index
      %c0_60 = arith.constant 0 : index
      %124 = vector.load %arg6[%c0_59, %c0_60] : memref<14x128xf32, #tpu.memory_space<vmem>>, vector<14x128xf32>
      %125 = arith.mulf %120, %120 : vector<14x128xf32>
      %126 = arith.addf %124, %125 : vector<14x128xf32>
      %c0_61 = arith.constant 0 : index
      %c0_62 = arith.constant 0 : index
      %127 = vector.load %arg6[%c0_61, %c0_62] : memref<14x128xf32, #tpu.memory_space<vmem>>, vector<14x128xf32>
      tpu.vector_store %arg6[%c0_61, %c0_62], %126 {strides = array<i32>} : memref<14x128xf32, #tpu.memory_space<vmem>>, vector<14x128xf32>,
    }
    %c14_i32_8 = arith.constant 14 : i32
    %c0_9 = arith.constant 0 : index
    %c0_10 = arith.constant 0 : index
    %7 = vector.load %arg5[%c0_9, %c0_10] : memref<14x128xf32, #tpu.memory_space<vmem>>, vector<14x128xf32>
    %cst_11 = arith.constant dense<0.000000e+00> : vector<128xf32>
    %8 = vector.multi_reduction <add>, %7, %cst_11 [0] : vector<14x128xf32> to vector<128xf32>
    %9 = vector.shape_cast %8 : vector<128xf32> to vector<1x128xf32>
    %c0_12 = arith.constant 0 : index
    %c0_13 = arith.constant 0 : index
    %10 = vector.load %arg6[%c0_12, %c0_13] : memref<14x128xf32, #tpu.memory_space<vmem>>, vector<14x128xf32>
    %cst_14 = arith.constant dense<0.000000e+00> : vector<128xf32>
    %11 = vector.multi_reduction <add>, %10, %cst_14 [0] : vector<14x128xf32> to vector<128xf32>
    %12 = vector.shape_cast %11 : vector<128xf32> to vector<1x128xf32>
    %13 = tpu.concatenate %9, %12 in 0 : vector<1x128xf32>, vector<1x128xf32> -> vector<2x128xf32>
    %14 = vector.shape_cast %13 : vector<2x128xf32> to vector<1x2x128xf32>
    %c0_15 = arith.constant 0 : index
    %c0_16 = arith.constant 0 : index
    %c0_17 = arith.constant 0 : index
    %15 = vector.load %arg4[%c0_15, %c0_16, %c0_17] : memref<1x2x128xf32, #tpu.memory_space<vmem>>, vector<1x2x128xf32>
    tpu.vector_store %arg4[%c0_15, %c0_16, %c0_17], %14 {strides = array<i32>} : memref<1x2x128xf32, #tpu.memory_space<vmem>>, vector<1x2x128xf32>,
    return
  }
  func.func @transform_0(%arg0: i32) -> (i32, i32, i32, i32) {
    %c0_i32 = arith.constant 0 : i32
    %c0_i32_0 = arith.constant 0 : i32
    %c0_i32_1 = arith.constant 0 : i32
    %c0_i32_2 = arith.constant 0 : i32
    return %arg0, %c0_i32, %c0_i32_0, %c0_i32_1 : i32, i32, i32, i32
  }
  func.func @transform_1(%arg0: i32) -> (i32, i32) {
    %c0_i32 = arith.constant 0 : i32
    %c0_i32_0 = arith.constant 0 : i32
    %c0_i32_1 = arith.constant 0 : i32
    return %c0_i32, %c0_i32_0 : i32, i32
  }
  func.func @transform_2(%arg0: i32) -> (i32, i32) {
    %c0_i32 = arith.constant 0 : i32
    %c0_i32_0 = arith.constant 0 : i32
    %c0_i32_1 = arith.constant 0 : i32
    return %c0_i32, %c0_i32_0 : i32, i32
  }
  func.func @transform_3(%arg0: i32) -> (i32, i32, i32) {
    %c0_i32 = arith.constant 0 : i32
    %c0_i32_0 = arith.constant 0 : i32
    %c0_i32_1 = arith.constant 0 : i32
    return %arg0, %c0_i32, %c0_i32_0 : i32, i32, i32
  }
}

module attributes {stable_mosaic.version = 11 : i64} {
  func.func @_bn2_act_kernel(%arg0: i32, %arg1: memref<1x14x14x128xf32, #tpu.memory_space<vmem>>, %arg2: memref<1x128xf32, #tpu.memory_space<vmem>>, %arg3: memref<1x128xf32, #tpu.memory_space<vmem>>, %arg4: memref<1x14x14x128xf32, #tpu.memory_space<vmem>>) attributes {dimension_semantics = [#tpu.dimension_semantics<parallel>], iteration_bounds = array<i64: 2>, scalar_prefetch = 0 : i64, scratch_operands = 0 : i64, tpu.core_type = #tpu.core_type<tc>, window_params = [{transform_indices = @transform_0, window_bounds = array<i64: 1, 14, 14, 128>}, {pipeline_mode = #tpu.pipeline_mode<synchronous>, transform_indices = @transform_1, window_bounds = array<i64: 1, 128>}, {pipeline_mode = #tpu.pipeline_mode<synchronous>, transform_indices = @transform_2, window_bounds = array<i64: 1, 128>}, {transform_indices = @transform_3, window_bounds = array<i64: 1, 14, 14, 128>}]} {
    %c0 = arith.constant 0 : index
    %c0_0 = arith.constant 0 : index
    %c0_1 = arith.constant 0 : index
    %c0_2 = arith.constant 0 : index
    %0 = vector.load %arg1[%c0, %c0_0, %c0_1, %c0_2] : memref<1x14x14x128xf32, #tpu.memory_space<vmem>>, vector<1x14x14x128xf32>
    %c0_3 = arith.constant 0 : index
    %c0_4 = arith.constant 0 : index
    %1 = vector.load %arg2[%c0_3, %c0_4] : memref<1x128xf32, #tpu.memory_space<vmem>>, vector<1x128xf32>
    %2 = vector.shape_cast %1 : vector<1x128xf32> to vector<1x1x1x128xf32>
    %3 = vector.broadcast %2 : vector<1x1x1x128xf32> to vector<1x14x14x128xf32>
    %4 = arith.mulf %0, %3 : vector<1x14x14x128xf32>
    %c0_5 = arith.constant 0 : index
    %c0_6 = arith.constant 0 : index
    %5 = vector.load %arg3[%c0_5, %c0_6] : memref<1x128xf32, #tpu.memory_space<vmem>>, vector<1x128xf32>
    %6 = vector.shape_cast %5 : vector<1x128xf32> to vector<1x1x1x128xf32>
    %7 = vector.broadcast %6 : vector<1x1x1x128xf32> to vector<1x14x14x128xf32>
    %8 = arith.addf %4, %7 : vector<1x14x14x128xf32>
    %cst = arith.constant 0.000000e+00 : f32
    %9 = vector.broadcast %cst : f32 to vector<1x14x14x128xf32>
    %10 = arith.maximumf %8, %9 : vector<1x14x14x128xf32>
    %c0_7 = arith.constant 0 : index
    %c0_8 = arith.constant 0 : index
    %c0_9 = arith.constant 0 : index
    %c0_10 = arith.constant 0 : index
    %11 = vector.load %arg4[%c0_7, %c0_8, %c0_9, %c0_10] : memref<1x14x14x128xf32, #tpu.memory_space<vmem>>, vector<1x14x14x128xf32>
    tpu.vector_store %arg4[%c0_7, %c0_8, %c0_9, %c0_10], %10 {strides = array<i32>} : memref<1x14x14x128xf32, #tpu.memory_space<vmem>>, vector<1x14x14x128xf32>,
    return
  }
  func.func @transform_0(%arg0: i32) -> (i32, i32, i32, i32) {
    %c0_i32 = arith.constant 0 : i32
    %c0_i32_0 = arith.constant 0 : i32
    %c0_i32_1 = arith.constant 0 : i32
    %c0_i32_2 = arith.constant 0 : i32
    return %arg0, %c0_i32, %c0_i32_0, %c0_i32_1 : i32, i32, i32, i32
  }
  func.func @transform_1(%arg0: i32) -> (i32, i32) {
    %c0_i32 = arith.constant 0 : i32
    %c0_i32_0 = arith.constant 0 : i32
    %c0_i32_1 = arith.constant 0 : i32
    return %c0_i32, %c0_i32_0 : i32, i32
  }
  func.func @transform_2(%arg0: i32) -> (i32, i32) {
    %c0_i32 = arith.constant 0 : i32
    %c0_i32_0 = arith.constant 0 : i32
    %c0_i32_1 = arith.constant 0 : i32
    return %c0_i32, %c0_i32_0 : i32, i32
  }
  func.func @transform_3(%arg0: i32) -> (i32, i32, i32, i32) {
    %c0_i32 = arith.constant 0 : i32
    %c0_i32_0 = arith.constant 0 : i32
    %c0_i32_1 = arith.constant 0 : i32
    %c0_i32_2 = arith.constant 0 : i32
    return %arg0, %c0_i32, %c0_i32_0, %c0_i32_1 : i32, i32, i32, i32
  }
}

module attributes {stable_mosaic.version = 11 : i64} {
  func.func @_fused_dw_pw_kernel(%arg0: i32, %arg1: memref<1x16x16x128xf32, #tpu.memory_space<vmem>>, %arg2: memref<9x128xf32, #tpu.memory_space<vmem>>, %arg3: memref<1x128xf32, #tpu.memory_space<vmem>>, %arg4: memref<1x128xf32, #tpu.memory_space<vmem>>, %arg5: memref<1x128xf32, #tpu.memory_space<vmem>>, %arg6: memref<128x128xf32, #tpu.memory_space<vmem>>, %arg7: memref<1x128xf32, #tpu.memory_space<vmem>>, %arg8: memref<1x14x14x128xf32, #tpu.memory_space<vmem>>, %arg9: memref<1x2x128xf32, #tpu.memory_space<vmem>>, %arg10: memref<14x128xf32, #tpu.memory_space<vmem>>, %arg11: memref<14x128xf32, #tpu.memory_space<vmem>>) attributes {dimension_semantics = [#tpu.dimension_semantics<parallel>], iteration_bounds = array<i64: 2>, scalar_prefetch = 0 : i64, scratch_operands = 2 : i64, tpu.core_type = #tpu.core_type<tc>, window_params = [{transform_indices = @transform_0, window_bounds = array<i64: 1, 16, 16, 128>}, {pipeline_mode = #tpu.pipeline_mode<synchronous>, transform_indices = @transform_1, window_bounds = array<i64: 9, 128>}, {pipeline_mode = #tpu.pipeline_mode<synchronous>, transform_indices = @transform_2, window_bounds = array<i64: 1, 128>}, {pipeline_mode = #tpu.pipeline_mode<synchronous>, transform_indices = @transform_3, window_bounds = array<i64: 1, 128>}, {pipeline_mode = #tpu.pipeline_mode<synchronous>, transform_indices = @transform_4, window_bounds = array<i64: 1, 128>}, {pipeline_mode = #tpu.pipeline_mode<synchronous>, transform_indices = @transform_5, window_bounds = array<i64: 128, 128>}, {pipeline_mode = #tpu.pipeline_mode<synchronous>, transform_indices = @transform_6, window_bounds = array<i64: 1, 128>}, {transform_indices = @transform_7, window_bounds = array<i64: 1, 14, 14, 128>}, {transform_indices = @transform_8, window_bounds = array<i64: 1, 2, 128>}]} {
    %c0 = arith.constant 0 : index
    %c0_0 = arith.constant 0 : index
    %0 = vector.load %arg2[%c0, %c0_0] : memref<9x128xf32, #tpu.memory_space<vmem>>, vector<9x128xf32>
    %c0_1 = arith.constant 0 : index
    %c0_2 = arith.constant 0 : index
    %1 = vector.load %arg4[%c0_1, %c0_2] : memref<1x128xf32, #tpu.memory_space<vmem>>, vector<1x128xf32>
    %c0_3 = arith.constant 0 : index
    %c0_4 = arith.constant 0 : index
    %2 = vector.load %arg5[%c0_3, %c0_4] : memref<1x128xf32, #tpu.memory_space<vmem>>, vector<1x128xf32>
    %c0_5 = arith.constant 0 : index
    %c0_6 = arith.constant 0 : index
    %3 = vector.load %arg3[%c0_5, %c0_6] : memref<1x128xf32, #tpu.memory_space<vmem>>, vector<1x128xf32>
    %4 = arith.mulf %3, %1 : vector<1x128xf32>
    %5 = arith.addf %2, %4 : vector<1x128xf32>
    %c0_7 = arith.constant 0 : index
    %c0_8 = arith.constant 0 : index
    %6 = vector.load %arg6[%c0_7, %c0_8] : memref<128x128xf32, #tpu.memory_space<vmem>>, vector<128x128xf32>
    %c0_9 = arith.constant 0 : index
    %c0_10 = arith.constant 0 : index
    %7 = vector.load %arg7[%c0_9, %c0_10] : memref<1x128xf32, #tpu.memory_space<vmem>>, vector<1x128xf32>
    %cst = arith.constant 0.000000e+00 : f32
    %8 = vector.broadcast %cst : f32 to vector<14x128xf32>
    %c0_11 = arith.constant 0 : index
    %c0_12 = arith.constant 0 : index
    %9 = vector.load %arg10[%c0_11, %c0_12] : memref<14x128xf32, #tpu.memory_space<vmem>>, vector<14x128xf32>
    tpu.vector_store %arg10[%c0_11, %c0_12], %8 {strides = array<i32>} : memref<14x128xf32, #tpu.memory_space<vmem>>, vector<14x128xf32>,
    %cst_13 = arith.constant 0.000000e+00 : f32
    %10 = vector.broadcast %cst_13 : f32 to vector<14x128xf32>
    %c0_14 = arith.constant 0 : index
    %c0_15 = arith.constant 0 : index
    %11 = vector.load %arg11[%c0_14, %c0_15] : memref<14x128xf32, #tpu.memory_space<vmem>>, vector<14x128xf32>
    tpu.vector_store %arg11[%c0_14, %c0_15], %10 {strides = array<i32>} : memref<14x128xf32, #tpu.memory_space<vmem>>, vector<14x128xf32>,
    %c0_i32 = arith.constant 0 : i32
    %c14_i32 = arith.constant 14 : i32
    %12 = arith.addi %c0_i32, %c14_i32 : i32
    %c1_i32 = arith.constant 1 : i32
    scf.for %arg12 = %c0_i32 to %12 step %c1_i32  : i32 {
      %c1_i32_26 = arith.constant 1 : i32
      %22 = arith.muli %arg12, %c1_i32_26 : i32
      %c0_i32_27 = arith.constant 0 : i32
      %23 = arith.addi %c0_i32_27, %22 : i32
      %c1_i32_28 = arith.constant 1 : i32
      %24 = arith.muli %23, %c1_i32_28 : i32
      %cst_29 = arith.constant 0.000000e+00 : f32
      %25 = vector.broadcast %cst_29 : f32 to vector<14x128xf32>
      %c0_i32_30 = arith.constant 0 : i32
      %26 = arith.addi %24, %c0_i32_30 : i32
      %c0_31 = arith.constant 0 : index
      %27 = arith.index_cast %26 : i32 to index
      %c0_32 = arith.constant 0 : index
      %c0_33 = arith.constant 0 : index
      %28 = vector.load %arg1[%c0_31, %27, %c0_32, %c0_33] : memref<1x16x16x128xf32, #tpu.memory_space<vmem>>, vector<1x1x14x128xf32>
      %29 = vector.shape_cast %28 : vector<1x1x14x128xf32> to vector<1x14x128xf32>
      %30 = vector.shape_cast %29 : vector<1x14x128xf32> to vector<14x128xf32>
      %31 = vector.extract_strided_slice %0 {offsets = [0, 0], sizes = [1, 128], strides = [1, 1]} : vector<9x128xf32> to vector<1x128xf32>
      %32 = vector.shape_cast %31 : vector<1x128xf32> to vector<128xf32>
      %33 = vector.shape_cast %32 : vector<128xf32> to vector<1x128xf32>
      %34 = vector.broadcast %33 : vector<1x128xf32> to vector<14x128xf32>
      %35 = arith.mulf %30, %34 : vector<14x128xf32>
      %36 = arith.addf %25, %35 : vector<14x128xf32>
      %c0_i32_34 = arith.constant 0 : i32
      %37 = arith.addi %24, %c0_i32_34 : i32
      %c0_35 = arith.constant 0 : index
      %38 = arith.index_cast %37 : i32 to index
      %c1 = arith.constant 1 : index
      %c0_36 = arith.constant 0 : index
      %39 = vector.load %arg1[%c0_35, %38, %c1, %c0_36] : memref<1x16x16x128xf32, #tpu.memory_space<vmem>>, vector<1x1x14x128xf32>
      %40 = vector.shape_cast %39 : vector<1x1x14x128xf32> to vector<1x14x128xf32>
      %41 = vector.shape_cast %40 : vector<1x14x128xf32> to vector<14x128xf32>
      %42 = vector.extract_strided_slice %0 {offsets = [1, 0], sizes = [1, 128], strides = [1, 1]} : vector<9x128xf32> to vector<1x128xf32>
      %43 = vector.shape_cast %42 : vector<1x128xf32> to vector<128xf32>
      %44 = vector.shape_cast %43 : vector<128xf32> to vector<1x128xf32>
      %45 = vector.broadcast %44 : vector<1x128xf32> to vector<14x128xf32>
      %46 = arith.mulf %41, %45 : vector<14x128xf32>
      %47 = arith.addf %36, %46 : vector<14x128xf32>
      %c0_i32_37 = arith.constant 0 : i32
      %48 = arith.addi %24, %c0_i32_37 : i32
      %c0_38 = arith.constant 0 : index
      %49 = arith.index_cast %48 : i32 to index
      %c2 = arith.constant 2 : index
      %c0_39 = arith.constant 0 : index
      %50 = vector.load %arg1[%c0_38, %49, %c2, %c0_39] : memref<1x16x16x128xf32, #tpu.memory_space<vmem>>, vector<1x1x14x128xf32>
      %51 = vector.shape_cast %50 : vector<1x1x14x128xf32> to vector<1x14x128xf32>
      %52 = vector.shape_cast %51 : vector<1x14x128xf32> to vector<14x128xf32>
      %53 = vector.extract_strided_slice %0 {offsets = [2, 0], sizes = [1, 128], strides = [1, 1]} : vector<9x128xf32> to vector<1x128xf32>
      %54 = vector.shape_cast %53 : vector<1x128xf32> to vector<128xf32>
      %55 = vector.shape_cast %54 : vector<128xf32> to vector<1x128xf32>
      %56 = vector.broadcast %55 : vector<1x128xf32> to vector<14x128xf32>
      %57 = arith.mulf %52, %56 : vector<14x128xf32>
      %58 = arith.addf %47, %57 : vector<14x128xf32>
      %c1_i32_40 = arith.constant 1 : i32
      %59 = arith.addi %24, %c1_i32_40 : i32
      %c0_41 = arith.constant 0 : index
      %60 = arith.index_cast %59 : i32 to index
      %c0_42 = arith.constant 0 : index
      %c0_43 = arith.constant 0 : index
      %61 = vector.load %arg1[%c0_41, %60, %c0_42, %c0_43] : memref<1x16x16x128xf32, #tpu.memory_space<vmem>>, vector<1x1x14x128xf32>
      %62 = vector.shape_cast %61 : vector<1x1x14x128xf32> to vector<1x14x128xf32>
      %63 = vector.shape_cast %62 : vector<1x14x128xf32> to vector<14x128xf32>
      %64 = vector.extract_strided_slice %0 {offsets = [3, 0], sizes = [1, 128], strides = [1, 1]} : vector<9x128xf32> to vector<1x128xf32>
      %65 = vector.shape_cast %64 : vector<1x128xf32> to vector<128xf32>
      %66 = vector.shape_cast %65 : vector<128xf32> to vector<1x128xf32>
      %67 = vector.broadcast %66 : vector<1x128xf32> to vector<14x128xf32>
      %68 = arith.mulf %63, %67 : vector<14x128xf32>
      %69 = arith.addf %58, %68 : vector<14x128xf32>
      %c1_i32_44 = arith.constant 1 : i32
      %70 = arith.addi %24, %c1_i32_44 : i32
      %c0_45 = arith.constant 0 : index
      %71 = arith.index_cast %70 : i32 to index
      %c1_46 = arith.constant 1 : index
      %c0_47 = arith.constant 0 : index
      %72 = vector.load %arg1[%c0_45, %71, %c1_46, %c0_47] : memref<1x16x16x128xf32, #tpu.memory_space<vmem>>, vector<1x1x14x128xf32>
      %73 = vector.shape_cast %72 : vector<1x1x14x128xf32> to vector<1x14x128xf32>
      %74 = vector.shape_cast %73 : vector<1x14x128xf32> to vector<14x128xf32>
      %75 = vector.extract_strided_slice %0 {offsets = [4, 0], sizes = [1, 128], strides = [1, 1]} : vector<9x128xf32> to vector<1x128xf32>
      %76 = vector.shape_cast %75 : vector<1x128xf32> to vector<128xf32>
      %77 = vector.shape_cast %76 : vector<128xf32> to vector<1x128xf32>
      %78 = vector.broadcast %77 : vector<1x128xf32> to vector<14x128xf32>
      %79 = arith.mulf %74, %78 : vector<14x128xf32>
      %80 = arith.addf %69, %79 : vector<14x128xf32>
      %c1_i32_48 = arith.constant 1 : i32
      %81 = arith.addi %24, %c1_i32_48 : i32
      %c0_49 = arith.constant 0 : index
      %82 = arith.index_cast %81 : i32 to index
      %c2_50 = arith.constant 2 : index
      %c0_51 = arith.constant 0 : index
      %83 = vector.load %arg1[%c0_49, %82, %c2_50, %c0_51] : memref<1x16x16x128xf32, #tpu.memory_space<vmem>>, vector<1x1x14x128xf32>
      %84 = vector.shape_cast %83 : vector<1x1x14x128xf32> to vector<1x14x128xf32>
      %85 = vector.shape_cast %84 : vector<1x14x128xf32> to vector<14x128xf32>
      %86 = vector.extract_strided_slice %0 {offsets = [5, 0], sizes = [1, 128], strides = [1, 1]} : vector<9x128xf32> to vector<1x128xf32>
      %87 = vector.shape_cast %86 : vector<1x128xf32> to vector<128xf32>
      %88 = vector.shape_cast %87 : vector<128xf32> to vector<1x128xf32>
      %89 = vector.broadcast %88 : vector<1x128xf32> to vector<14x128xf32>
      %90 = arith.mulf %85, %89 : vector<14x128xf32>
      %91 = arith.addf %80, %90 : vector<14x128xf32>
      %c2_i32 = arith.constant 2 : i32
      %92 = arith.addi %24, %c2_i32 : i32
      %c0_52 = arith.constant 0 : index
      %93 = arith.index_cast %92 : i32 to index
      %c0_53 = arith.constant 0 : index
      %c0_54 = arith.constant 0 : index
      %94 = vector.load %arg1[%c0_52, %93, %c0_53, %c0_54] : memref<1x16x16x128xf32, #tpu.memory_space<vmem>>, vector<1x1x14x128xf32>
      %95 = vector.shape_cast %94 : vector<1x1x14x128xf32> to vector<1x14x128xf32>
      %96 = vector.shape_cast %95 : vector<1x14x128xf32> to vector<14x128xf32>
      %97 = vector.extract_strided_slice %0 {offsets = [6, 0], sizes = [1, 128], strides = [1, 1]} : vector<9x128xf32> to vector<1x128xf32>
      %98 = vector.shape_cast %97 : vector<1x128xf32> to vector<128xf32>
      %99 = vector.shape_cast %98 : vector<128xf32> to vector<1x128xf32>
      %100 = vector.broadcast %99 : vector<1x128xf32> to vector<14x128xf32>
      %101 = arith.mulf %96, %100 : vector<14x128xf32>
      %102 = arith.addf %91, %101 : vector<14x128xf32>
      %c2_i32_55 = arith.constant 2 : i32
      %103 = arith.addi %24, %c2_i32_55 : i32
      %c0_56 = arith.constant 0 : index
      %104 = arith.index_cast %103 : i32 to index
      %c1_57 = arith.constant 1 : index
      %c0_58 = arith.constant 0 : index
      %105 = vector.load %arg1[%c0_56, %104, %c1_57, %c0_58] : memref<1x16x16x128xf32, #tpu.memory_space<vmem>>, vector<1x1x14x128xf32>
      %106 = vector.shape_cast %105 : vector<1x1x14x128xf32> to vector<1x14x128xf32>
      %107 = vector.shape_cast %106 : vector<1x14x128xf32> to vector<14x128xf32>
      %108 = vector.extract_strided_slice %0 {offsets = [7, 0], sizes = [1, 128], strides = [1, 1]} : vector<9x128xf32> to vector<1x128xf32>
      %109 = vector.shape_cast %108 : vector<1x128xf32> to vector<128xf32>
      %110 = vector.shape_cast %109 : vector<128xf32> to vector<1x128xf32>
      %111 = vector.broadcast %110 : vector<1x128xf32> to vector<14x128xf32>
      %112 = arith.mulf %107, %111 : vector<14x128xf32>
      %113 = arith.addf %102, %112 : vector<14x128xf32>
      %c2_i32_59 = arith.constant 2 : i32
      %114 = arith.addi %24, %c2_i32_59 : i32
      %c0_60 = arith.constant 0 : index
      %115 = arith.index_cast %114 : i32 to index
      %c2_61 = arith.constant 2 : index
      %c0_62 = arith.constant 0 : index
      %116 = vector.load %arg1[%c0_60, %115, %c2_61, %c0_62] : memref<1x16x16x128xf32, #tpu.memory_space<vmem>>, vector<1x1x14x128xf32>
      %117 = vector.shape_cast %116 : vector<1x1x14x128xf32> to vector<1x14x128xf32>
      %118 = vector.shape_cast %117 : vector<1x14x128xf32> to vector<14x128xf32>
      %119 = vector.extract_strided_slice %0 {offsets = [8, 0], sizes = [1, 128], strides = [1, 1]} : vector<9x128xf32> to vector<1x128xf32>
      %120 = vector.shape_cast %119 : vector<1x128xf32> to vector<128xf32>
      %121 = vector.shape_cast %120 : vector<128xf32> to vector<1x128xf32>
      %122 = vector.broadcast %121 : vector<1x128xf32> to vector<14x128xf32>
      %123 = arith.mulf %118, %122 : vector<14x128xf32>
      %124 = arith.addf %113, %123 : vector<14x128xf32>
      %125 = vector.broadcast %1 : vector<1x128xf32> to vector<14x128xf32>
      %126 = arith.mulf %124, %125 : vector<14x128xf32>
      %127 = vector.broadcast %5 : vector<1x128xf32> to vector<14x128xf32>
      %128 = arith.addf %126, %127 : vector<14x128xf32>
      %cst_63 = arith.constant 0.000000e+00 : f32
      %129 = vector.broadcast %cst_63 : f32 to vector<14x128xf32>
      %130 = arith.maximumf %128, %129 : vector<14x128xf32>
      %cst_64 = arith.constant dense<0.000000e+00> : vector<14x128xf32>
      %131 = tpu.matmul %130, %6, %cst_64 {dimension_numbers = #tpu.dot_dimension_numbers<[1], [0], [0], [1], [0, 0, 1, 1], [], []>} : vector<14x128xf32>, vector<128x128xf32>, vector<14x128xf32> -> vector<14x128xf32>
      %132 = vector.broadcast %7 : vector<1x128xf32> to vector<14x128xf32>
      %133 = arith.addf %131, %132 : vector<14x128xf32>
      %134 = vector.shape_cast %133 : vector<14x128xf32> to vector<1x14x128xf32>
      %c0_65 = arith.constant 0 : index
      %135 = arith.index_cast %23 : i32 to index
      %c0_66 = arith.constant 0 : index
      %c0_67 = arith.constant 0 : index
      %136 = vector.load %arg8[%c0_65, %135, %c0_66, %c0_67] : memref<1x14x14x128xf32, #tpu.memory_space<vmem>>, vector<1x1x14x128xf32>
      %137 = vector.shape_cast %136 : vector<1x1x14x128xf32> to vector<1x14x128xf32>
      %138 = vector.shape_cast %134 : vector<1x14x128xf32> to vector<1x1x14x128xf32>
      tpu.vector_store %arg8[%c0_65, %135, %c0_66, %c0_67], %138 {strides = array<i32>} : memref<1x14x14x128xf32, #tpu.memory_space<vmem>>, vector<1x1x14x128xf32>,
      %c0_68 = arith.constant 0 : index
      %c0_69 = arith.constant 0 : index
      %139 = vector.load %arg10[%c0_68, %c0_69] : memref<14x128xf32, #tpu.memory_space<vmem>>, vector<14x128xf32>
      %140 = arith.addf %139, %133 : vector<14x128xf32>
      %c0_70 = arith.constant 0 : index
      %c0_71 = arith.constant 0 : index
      %141 = vector.load %arg10[%c0_70, %c0_71] : memref<14x128xf32, #tpu.memory_space<vmem>>, vector<14x128xf32>
      tpu.vector_store %arg10[%c0_70, %c0_71], %140 {strides = array<i32>} : memref<14x128xf32, #tpu.memory_space<vmem>>, vector<14x128xf32>,
      %c0_72 = arith.constant 0 : index
      %c0_73 = arith.constant 0 : index
      %142 = vector.load %arg11[%c0_72, %c0_73] : memref<14x128xf32, #tpu.memory_space<vmem>>, vector<14x128xf32>
      %143 = arith.mulf %133, %133 : vector<14x128xf32>
      %144 = arith.addf %142, %143 : vector<14x128xf32>
      %c0_74 = arith.constant 0 : index
      %c0_75 = arith.constant 0 : index
      %145 = vector.load %arg11[%c0_74, %c0_75] : memref<14x128xf32, #tpu.memory_space<vmem>>, vector<14x128xf32>
      tpu.vector_store %arg11[%c0_74, %c0_75], %144 {strides = array<i32>} : memref<14x128xf32, #tpu.memory_space<vmem>>, vector<14x128xf32>,
    }
    %c14_i32_16 = arith.constant 14 : i32
    %c0_17 = arith.constant 0 : index
    %c0_18 = arith.constant 0 : index
    %13 = vector.load %arg10[%c0_17, %c0_18] : memref<14x128xf32, #tpu.memory_space<vmem>>, vector<14x128xf32>
    %cst_19 = arith.constant dense<0.000000e+00> : vector<128xf32>
    %14 = vector.multi_reduction <add>, %13, %cst_19 [0] : vector<14x128xf32> to vector<128xf32>
    %15 = vector.shape_cast %14 : vector<128xf32> to vector<1x128xf32>
    %c0_20 = arith.constant 0 : index
    %c0_21 = arith.constant 0 : index
    %16 = vector.load %arg11[%c0_20, %c0_21] : memref<14x128xf32, #tpu.memory_space<vmem>>, vector<14x128xf32>
    %cst_22 = arith.constant dense<0.000000e+00> : vector<128xf32>
    %17 = vector.multi_reduction <add>, %16, %cst_22 [0] : vector<14x128xf32> to vector<128xf32>
    %18 = vector.shape_cast %17 : vector<128xf32> to vector<1x128xf32>
    %19 = tpu.concatenate %15, %18 in 0 : vector<1x128xf32>, vector<1x128xf32> -> vector<2x128xf32>
    %20 = vector.shape_cast %19 : vector<2x128xf32> to vector<1x2x128xf32>
    %c0_23 = arith.constant 0 : index
    %c0_24 = arith.constant 0 : index
    %c0_25 = arith.constant 0 : index
    %21 = vector.load %arg9[%c0_23, %c0_24, %c0_25] : memref<1x2x128xf32, #tpu.memory_space<vmem>>, vector<1x2x128xf32>
    tpu.vector_store %arg9[%c0_23, %c0_24, %c0_25], %20 {strides = array<i32>} : memref<1x2x128xf32, #tpu.memory_space<vmem>>, vector<1x2x128xf32>,
    return
  }
  func.func @transform_0(%arg0: i32) -> (i32, i32, i32, i32) {
    %c0_i32 = arith.constant 0 : i32
    %c0_i32_0 = arith.constant 0 : i32
    %c0_i32_1 = arith.constant 0 : i32
    %c0_i32_2 = arith.constant 0 : i32
    return %arg0, %c0_i32, %c0_i32_0, %c0_i32_1 : i32, i32, i32, i32
  }
  func.func @transform_1(%arg0: i32) -> (i32, i32) {
    %c0_i32 = arith.constant 0 : i32
    %c0_i32_0 = arith.constant 0 : i32
    %c0_i32_1 = arith.constant 0 : i32
    return %c0_i32, %c0_i32_0 : i32, i32
  }
  func.func @transform_2(%arg0: i32) -> (i32, i32) {
    %c0_i32 = arith.constant 0 : i32
    %c0_i32_0 = arith.constant 0 : i32
    %c0_i32_1 = arith.constant 0 : i32
    return %c0_i32, %c0_i32_0 : i32, i32
  }
  func.func @transform_3(%arg0: i32) -> (i32, i32) {
    %c0_i32 = arith.constant 0 : i32
    %c0_i32_0 = arith.constant 0 : i32
    %c0_i32_1 = arith.constant 0 : i32
    return %c0_i32, %c0_i32_0 : i32, i32
  }
  func.func @transform_4(%arg0: i32) -> (i32, i32) {
    %c0_i32 = arith.constant 0 : i32
    %c0_i32_0 = arith.constant 0 : i32
    %c0_i32_1 = arith.constant 0 : i32
    return %c0_i32, %c0_i32_0 : i32, i32
  }
  func.func @transform_5(%arg0: i32) -> (i32, i32) {
    %c0_i32 = arith.constant 0 : i32
    %c0_i32_0 = arith.constant 0 : i32
    %c0_i32_1 = arith.constant 0 : i32
    return %c0_i32, %c0_i32_0 : i32, i32
  }
  func.func @transform_6(%arg0: i32) -> (i32, i32) {
    %c0_i32 = arith.constant 0 : i32
    %c0_i32_0 = arith.constant 0 : i32
    %c0_i32_1 = arith.constant 0 : i32
    return %c0_i32, %c0_i32_0 : i32, i32
  }
  func.func @transform_7(%arg0: i32) -> (i32, i32, i32, i32) {
    %c0_i32 = arith.constant 0 : i32
    %c0_i32_0 = arith.constant 0 : i32
    %c0_i32_1 = arith.constant 0 : i32
    %c0_i32_2 = arith.constant 0 : i32
    return %arg0, %c0_i32, %c0_i32_0, %c0_i32_1 : i32, i32, i32, i32
  }
  func.func @transform_8(%arg0: i32) -> (i32, i32, i32) {
    %c0_i32 = arith.constant 0 : i32
    %c0_i32_0 = arith.constant 0 : i32
    %c0_i32_1 = arith.constant 0 : i32
    return %arg0, %c0_i32, %c0_i32_0 : i32, i32, i32
  }
}

</mosaic_0001>

<bundles_post_ra>
// kernel: depthwise_conv_block_nhwc.5
= control target key start
LH: loop header
LB: loop body
LE: loop exit
PB: predicated region body
PF: predicated region fallthrough
CT: control target
= control target key end

     0   :  { %s428_s12 = smov 0   ;;  %s571_s0 = inlined_call_operand.vmem [shape: f32[2,14,14,128], index: 0, kind: input, shape index: {}]   ;;  %s572_s1 = inlined_call_operand.vmem [shape: f32[1,128], index: 1, kind: input, shape index: {}]   ;;  %s573_s2 = inlined_call_operand.vmem [shape: f32[1,128], index: 2, kind: input, shape index: {}]   ;;  %s574_s3 = inlined_call_operand.vmem [shape: f32[2,14,14,128], index: 3, kind: output, shape index: {}]  }
   0x1 LB: > { %s380_s13 = sadd.s32 4294967295, %s406_s12   ;;  %p384_p0 = scmp.ge.s32.totalorder %s406_s12, 1  ;;  %s406_s12 = sphi %s428_s12, %s13_s12  }
   0x2   : > { %p137_p1 = scmp.lt.s32.totalorder %s406_s12, 3 }
   0x4   : > { %p138_p2 = pnand %p384_p0, %p137_p1 }
   0x5   : > { %p161_p3 = scmp.lt.s32.totalorder (!%p138_p2), %s380_s13, 1  ;;  %v439_v0 = vld [vmem:[%s572_s1] ss:$0 sm:$0xff] (!%p138_p2) }
   0x6   : > { %141 = sbr.rel (%p138_p2) target bundleno = 44 (0x2c), region = 32  ;;  %v449_v1 = vld [vmem:[%s573_s2] ss:$0 sm:$0xff] (!%p138_p2) }
   0xd   : > { %s576_s13 = smov (!%p161_p3, %s380_s13), 1 }
   0xe   : > { %s391_s14 = smul.u32 224, %s576_s13 }
  0x10   : > { %s444_s19 = scalar_lea.vmem %s571_s0, %s391_s14  ;;  %s473_s24 = scalar_lea.vmem %s574_s3, %s391_s14 }
  0x11   : > { %v171_v2 = vld [vmem:[%s444_s19] sm:$0xff]  ;;  %v172_v3 = vld [vmem:[%s444_s19 + $0x8] sm:$0x3f]  ;;  %v173_v4 = vld [vmem:[%s444_s19 + $0x10] sm:$0xff] }
  0x12   : > { %v206_v5 = vmul.f32 %v439_v0, %v171_v2  ;;  %v207_v6 = vmul.f32 %v439_v0, %v172_v3  ;;  %v208_v7 = vmul.f32 %v439_v0, %v173_v4  ;;  %v174_v8 = vld [vmem:[%s444_s19 + $0x18] sm:$0x3f]  ;;  %v175_v9 = vld [vmem:[%s444_s19 + $0x20] sm:$0xff]  ;;  %v176_v10 = vld [vmem:[%s444_s19 + $0x28] sm:$0x3f] }
  0x13   : > { %v209_v11 = vmul.f32 %v439_v0, %v174_v8  ;;  %v210_v12 = vmul.f32 %v439_v0, %v175_v9  ;;  %v211_v13 = vmul.f32 %v439_v0, %v176_v10  ;;  %v177_v14 = vld [vmem:[%s444_s19 + $0x30] sm:$0xff]  ;;  %v178_v15 = vld [vmem:[%s444_s19 + $0x38] sm:$0x3f]  ;;  %v179_v20 = vld [vmem:[%s444_s19 + $0x40] sm:$0xff] }
  0x14   : > { %v241_v16 = vadd.f32 %v449_v1, %v206_v5  ;;  %v242_v17 = vadd.f32 %v449_v1, %v207_v6  ;;  %v243_v18 = vadd.f32 %v449_v1, %v208_v7  ;;  %v212_v19 = vmul.f32 %v439_v0, %v177_v14  ;;  %v180_v25 = vld [vmem:[%s444_s19 + $0x48] sm:$0x3f]  ;;  %v181_v26 = vld [vmem:[%s444_s19 + $0x50] sm:$0xff]  ;;  %v182_v27 = vld [vmem:[%s444_s19 + $0x58] sm:$0x3f] }
  0x15   : > { %v244_v21 = vadd.f32 %v449_v1, %v209_v11  ;;  %v245_v22 = vadd.f32 %v449_v1, %v210_v12  ;;  %v246_v23 = vadd.f32 %v449_v1, %v211_v13  ;;  %v213_v24 = vmul.f32 %v439_v0, %v178_v15  ;;  %v183_v32 = vld [vmem:[%s444_s19 + $0x60] sm:$0xff]  ;;  %v184_v33 = vld [vmem:[%s444_s19 + $0x68] sm:$0x3f]  ;;  %v185_v38 = vld [vmem:[%s444_s19 + $0x70] sm:$0xff] }
  0x16   : > { %v269_v28 = vmax.f32 %v241_v16, 0.0  ;;  %v270_v29 = vmax.f32 %v242_v17, 0.0  ;;  %v271_v30 = vmax.f32 %v243_v18, 0.0  ;;  %v247_v31 = vadd.f32 %v449_v1, %v212_v19  ;;  %v186_v43 = vld [vmem:[%s444_s19 + $0x78] sm:$0x3f]  ;;  %v187_v52 = vld [vmem:[%s444_s19 + $0x80] sm:$0xff] }
  0x17   : > { %v272_v34 = vmax.f32 %v244_v21, 0.0  ;;  %v273_v35 = vmax.f32 %v245_v22, 0.0  ;;  %v274_v36 = vmax.f32 %v246_v23, 0.0  ;;  %v248_v37 = vadd.f32 %v449_v1, %v213_v24  ;;  %v188_v57 = vld [vmem:[%s444_s19 + $0x88] sm:$0x3f]  ;;  %v189_v58 = vld [vmem:[%s444_s19 + $0x90] sm:$0xff] }
  0x18   : > { %297 = vst [vmem:[%s473_s24] sm:$0xff] %v269_v28  ;;  %298 = vst [vmem:[%s473_s24 + $0x8] sm:$0x3f] %v270_v29  ;;  %v275_v39 = vmax.f32 %v247_v31, 0.0  ;;  %v214_v40 = vmul.f32 %v439_v0, %v179_v20  ;;  %v215_v41 = vmul.f32 %v439_v0, %v180_v25  ;;  %v216_v42 = vmul.f32 %v439_v0, %v181_v26  ;;  %v190_v59 = vld [vmem:[%s444_s19 + $0x98] sm:$0x3f]  ;;  %v191_v2 = vld [vmem:[%s444_s19 + $0xa0] sm:$0xff] }
  0x19   : > { %299 = vst [vmem:[%s473_s24 + $0x10] sm:$0xff] %v271_v30  ;;  %300 = vst [vmem:[%s473_s24 + $0x18] sm:$0x3f] %v272_v34  ;;  %v276_v44 = vmax.f32 %v248_v37, 0.0  ;;  %v217_v45 = vmul.f32 %v439_v0, %v182_v27  ;;  %v218_v46 = vmul.f32 %v439_v0, %v183_v32  ;;  %v219_v47 = vmul.f32 %v439_v0, %v184_v33  ;;  %v192_v3 = vld [vmem:[%s444_s19 + $0xa8] sm:$0x3f] }
  0x1a   : > { %301 = vst [vmem:[%s473_s24 + $0x20] sm:$0xff] %v273_v35  ;;  %302 = vst [vmem:[%s473_s24 + $0x28] sm:$0x3f] %v274_v36  ;;  %v249_v48 = vadd.f32 %v449_v1, %v214_v40  ;;  %v250_v49 = vadd.f32 %v449_v1, %v215_v41  ;;  %v251_v50 = vadd.f32 %v449_v1, %v216_v42  ;;  %v193_v8 = vld [vmem:[%s444_s19 + $0xb0] sm:$0xff]  ;;  %v194_v13 = vld [vmem:[%s444_s19 + $0xb8] sm:$0x3f] }
  0x1b   : > { %303 = vst [vmem:[%s473_s24 + $0x30] sm:$0xff] %v275_v39  ;;  %v220_v51 = vmul.f32 %v439_v0, %v185_v38  ;;  %304 = vst [vmem:[%s473_s24 + $0x38] sm:$0x3f] %v276_v44  ;;  %v252_v53 = vadd.f32 %v449_v1, %v217_v45  ;;  %v253_v54 = vadd.f32 %v449_v1, %v218_v46  ;;  %v195_v26 = vld [vmem:[%s444_s19 + $0xc0] sm:$0xff]  ;;  %v196_v27 = vld [vmem:[%s444_s19 + $0xc8] sm:$0x3f] }
  0x1c   : > { %v254_v55 = vadd.f32 %v449_v1, %v219_v47  ;;  %v221_v56 = vmul.f32 %v439_v0, %v186_v43  ;;  %v277_v60 = vmax.f32 %v249_v48, 0.0  ;;  %v278_v61 = vmax.f32 %v250_v49, 0.0  ;;  %v197_v28 = vld [vmem:[%s444_s19 + $0xd0] sm:$0xff]  ;;  %v198_v33 = vld [vmem:[%s444_s19 + $0xd8] sm:$0x3f] }
  0x1d   : > { %v279_v62 = vmax.f32 %v251_v50, 0.0  ;;  %v255_v63 = vadd.f32 %v449_v1, %v220_v51  ;;  %v280_v4 = vmax.f32 %v252_v53, 0.0  ;;  %v281_v5 = vmax.f32 %v253_v54, 0.0 }
  0x1e   : > { %v282_v6 = vmax.f32 %v254_v55, 0.0  ;;  %v256_v7 = vadd.f32 %v449_v1, %v221_v56  ;;  %305 = vst [vmem:[%s473_s24 + $0x40] sm:$0xff] %v277_v60  ;;  %306 = vst [vmem:[%s473_s24 + $0x48] sm:$0x3f] %v278_v61  ;;  %v222_v10 = vmul.f32 %v439_v0, %v187_v52  ;;  %v223_v11 = vmul.f32 %v439_v0, %v188_v57 }
  0x1f   : > { %307 = vst [vmem:[%s473_s24 + $0x50] sm:$0xff] %v279_v62  ;;  %v283_v9 = vmax.f32 %v255_v63, 0.0  ;;  %v224_v12 = vmul.f32 %v439_v0, %v189_v58  ;;  %308 = vst [vmem:[%s473_s24 + $0x58] sm:$0x3f] %v280_v4  ;;  %v225_v15 = vmul.f32 %v439_v0, %v190_v59  ;;  %v226_v16 = vmul.f32 %v439_v0, %v191_v2 }
  0x20   : > { %309 = vst [vmem:[%s473_s24 + $0x60] sm:$0xff] %v281_v5  ;;  %310 = vst [vmem:[%s473_s24 + $0x68] sm:$0x3f] %v282_v6  ;;  %v284_v14 = vmax.f32 %v256_v7, 0.0  ;;  %v227_v17 = vmul.f32 %v439_v0, %v192_v3  ;;  %v257_v18 = vadd.f32 %v449_v1, %v222_v10  ;;  %v258_v19 = vadd.f32 %v449_v1, %v223_v11 }
  0x21   : > { %311 = vst [vmem:[%s473_s24 + $0x70] sm:$0xff] %v283_v9  ;;  %v259_v20 = vadd.f32 %v449_v1, %v224_v12  ;;  %v228_v21 = vmul.f32 %v439_v0, %v193_v8  ;;  %v260_v22 = vadd.f32 %v449_v1, %v225_v15  ;;  %v261_v23 = vadd.f32 %v449_v1, %v226_v16 }
  0x22   : > { %312 = vst [vmem:[%s473_s24 + $0x78] sm:$0x3f] %v284_v14  ;;  %v262_v24 = vadd.f32 %v449_v1, %v227_v17  ;;  %v229_v25 = vmul.f32 %v439_v0, %v194_v13  ;;  %v285_v29 = vmax.f32 %v257_v18, 0.0  ;;  %v286_v30 = vmax.f32 %v258_v19, 0.0 }
  0x23   : > { %v287_v31 = vmax.f32 %v259_v20, 0.0  ;;  %v263_v32 = vadd.f32 %v449_v1, %v228_v21  ;;  %v288_v34 = vmax.f32 %v260_v22, 0.0  ;;  %v289_v35 = vmax.f32 %v261_v23, 0.0 }
  0x24   : > { %v290_v36 = vmax.f32 %v262_v24, 0.0  ;;  %v264_v37 = vadd.f32 %v449_v1, %v229_v25  ;;  %313 = vst [vmem:[%s473_s24 + $0x80] sm:$0xff] %v285_v29  ;;  %314 = vst [vmem:[%s473_s24 + $0x88] sm:$0x3f] %v286_v30  ;;  %v230_v39 = vmul.f32 %v439_v0, %v195_v26  ;;  %v231_v40 = vmul.f32 %v439_v0, %v196_v27 }
  0x25   : > { %315 = vst [vmem:[%s473_s24 + $0x90] sm:$0xff] %v287_v31  ;;  %v291_v38 = vmax.f32 %v263_v32, 0.0  ;;  %v232_v41 = vmul.f32 %v439_v0, %v197_v28  ;;  %316 = vst [vmem:[%s473_s24 + $0x98] sm:$0x3f] %v288_v34  ;;  %v233_v43 = vmul.f32 %v439_v0, %v198_v33 }
  0x26   : > { %317 = vst [vmem:[%s473_s24 + $0xa0] sm:$0xff] %v289_v35  ;;  %318 = vst [vmem:[%s473_s24 + $0xa8] sm:$0x3f] %v290_v36  ;;  %v292_v42 = vmax.f32 %v264_v37, 0.0  ;;  %v265_v44 = vadd.f32 %v449_v1, %v230_v39  ;;  %v266_v45 = vadd.f32 %v449_v1, %v231_v40 }
  0x27   : > { %319 = vst [vmem:[%s473_s24 + $0xb0] sm:$0xff] %v291_v38  ;;  %v267_v46 = vadd.f32 %v449_v1, %v232_v41  ;;  %v268_v47 = vadd.f32 %v449_v1, %v233_v43 }
  0x28   : > { %320 = vst [vmem:[%s473_s24 + $0xb8] sm:$0x3f] %v292_v42  ;;  %v293_v48 = vmax.f32 %v265_v44, 0.0  ;;  %v294_v49 = vmax.f32 %v266_v45, 0.0 }
  0x29   : > { %v295_v50 = vmax.f32 %v267_v46, 0.0  ;;  %v296_v51 = vmax.f32 %v268_v47, 0.0 }
  0x2a   : > { %321 = vst [vmem:[%s473_s24 + $0xc0] sm:$0xff] %v293_v48  ;;  %322 = vst [vmem:[%s473_s24 + $0xc8] sm:$0x3f] %v294_v49 }
  0x2b   : > { %323 = vst [vmem:[%s473_s24 + $0xd0] sm:$0xff] %v295_v50  ;;  %324 = vst [vmem:[%s473_s24 + $0xd8] sm:$0x3f] %v296_v51 }
  0x2c PF: > { %s13_s12 = sadd.s32 1, %s406_s12  }
  0x2d   : > { %p10_p4 = scmp.ge.s32.totalorder %s13_s12, 4  }
  0x2f   :  { %12 = sbr.rel (!%p10_p4) target bundleno = 1 (0x1), region = 62 }

// kernel: depthwise_conv_block_nhwc.3
= control target key start
LH: loop header
LB: loop body
LE: loop exit
PB: predicated region body
PF: predicated region fallthrough
CT: control target
= control target key end

     0   :  { %s474_s12 = smov 0   ;;  %s553_s0 = inlined_call_operand.vmem [shape: f32[2,16,16,128], index: 0, kind: input, shape index: {}]   ;;  %s554_s1 = inlined_call_operand.vmem [shape: f32[9,128], index: 1, kind: input, shape index: {}]   ;;  %s555_s2 = inlined_call_operand.vmem [shape: f32[1,128], index: 2, kind: input, shape index: {}]   ;;  %s556_s3 = inlined_call_operand.vmem [shape: f32[2,2,128], index: 3, kind: output, shape index: {}]  }
   0x1 LB: > { %s392_s13 = sadd.s32 4294967295, %s447_s12   ;;  %p396_p0 = scmp.ge.s32.totalorder %s447_s12, 1  ;;  %s447_s12 = sphi %s474_s12, %s13_s12  }
   0x2   : > { %p137_p1 = scmp.lt.s32.totalorder %s447_s12, 3 }
   0x4   : > { %p138_p2 = pnand %p396_p0, %p137_p1 }
   0x5   : > { %p160_p3 = scmp.lt.s32.totalorder (!%p138_p2), %s392_s13, 1  ;;  %v485_v0 = vld [vmem:[%s554_s1] sm:$0xff] (!%p138_p2)  ;;  %v490_v1 = vld [vmem:[%s554_s1 + $0x8] ss:$0 sm:$0xff] (!%p138_p2)  ;;  %v453_v3 = vmov (!%p138_p2), 0.0   ;;  %s507_s28 = smov (!%p138_p2), 0  }
   0x6   : > { %141 = sbr.rel (%p138_p2) target bundleno = 74 (0x4a), region = 32  ;;  %v495_v2 = vld [vmem:[%s555_s2] ss:$0 sm:$0xff] (!%p138_p2)  ;;  %172 = vst [vmem:[#allocation2] sm:$0xff] (!%p138_p2), %v453_v3  ;;  %173 = vst [vmem:[#allocation2 + $0x8] sm:$0x3f] (!%p138_p2), %v453_v3 }
   0x7   : > { %174 = vst [vmem:[#allocation3] sm:$0xff] (!%p138_p2), %v453_v3  ;;  %175 = vst [vmem:[#allocation3 + $0x8] sm:$0x3f] (!%p138_p2), %v453_v3 }
   0xd   : > { %s558_s13 = smov (!%p160_p3, %s392_s13), 1 }
   0xe   : > { %s419_s20 = sshll.u32 %s558_s13, 8  ;;  %s399_s21 = sshll.u32 %s558_s13, 1 }
   0xf   : > { %s500_s24 = scalar_lea.vmem %s553_s0, %s419_s20  ;;  %s505_s27 = scalar_lea.vmem %s556_s3, %s399_s21 }
  0x10 LB: >> { %v186_v4 = vlaneseq  ;;  %s400_s29 = sshll.u32 %s451_s28, 4  ;;  %s181_s28 = sadd.s32 1, %s451_s28   ;;  %s451_s28 = sphi %s507_s28, %s181_s28  }
  0x11   : >> { %s514_s30 = scalar_lea.vmem %s500_s24, %s400_s29  ;;  %p178_p4 = scmp.ge.s32.totalorder %s181_s28, 14  }
  0x12   : >> { %v187_v5 = vshrl.u32 %v186_v4, 7  ;;  %v184_v9 = vld [vmem:[%s514_s30] sm:$0xff]  ;;  %v402_v18 = vld [vmem:[%s514_s30 + $0x10] sm:$0xff]  ;;  %v185_v21 = vld [vmem:[%s514_s30 + $0x8] sm:$0x3f]  ;;  %vm304_vm0 = vcmask (%p178_p4), 1045504  }
  0x13   : >> { %v194_v10 = vld [vmem:[%s514_s30 + $0x1] sm:$0xff]  ;;  %v195_v26 = vld [vmem:[%s514_s30 + $0x9] sm:$0x3f]  ;;  %v404_v28 = vld [vmem:[%s514_s30 + $0x11] sm:$0xff]  ;;  %vm323_vm1 = vcmask (%p178_p4), 1040384  }
  0x14   : >> { %v188_v6 = vsub.s32 0, %v187_v5  ;;  %v198_v7 = vsub.s32 1, %v187_v5  ;;  %v208_v8 = vsub.s32 2, %v187_v5  ;;  %v204_v11 = vld [vmem:[%s514_s30 + $0x2] sm:$0xff]  ;;  %v221_v12 = vsub.s32 3, %v187_v5  ;;  %v406_v35 = vld [vmem:[%s514_s30 + $0x12] sm:$0xff] }
  0x15   : >> { %v231_v13 = vsub.s32 4, %v187_v5  ;;  %v241_v14 = vsub.s32 5, %v187_v5  ;;  %v254_v20 = vsub.s32 6, %v187_v5  ;;  %v205_v27 = vld [vmem:[%s514_s30 + $0xa] sm:$0x3f]  ;;  %v264_v32 = vsub.s32 7, %v187_v5 }
  0x16   : >> { %v189_v15 = vrot.slane %v485_v0, %v188_v6  ;;  %v199_v16 = vrot.slane %v485_v0, %v198_v7  ;;  %v209_v17 = vrot.slane %v485_v0, %v208_v8  ;;  %v222_v19 = vrot.slane %v485_v0, %v221_v12  ;;  %v403_v34 = vld [vmem:[%s514_s30 + $0x18] sm:$0x3f]  ;;  %v409_v42 = vld [vmem:[%s514_s30 + $0x20] sm:$0xff]  ;;  %v410_v54 = vld [vmem:[%s514_s30 + $0x28] sm:$0x3f] }
  0x17   : >> { %v232_v25 = vrot.slane %v485_v0, %v231_v13  ;;  %v242_v29 = vrot.slane %v485_v0, %v241_v14  ;;  %v255_v40 = vrot.slane %v485_v0, %v254_v20  ;;  %v405_v41 = vld [vmem:[%s514_s30 + $0x19] sm:$0x3f]  ;;  %v265_v47 = vrot.slane %v485_v0, %v264_v32  ;;  %v411_v49 = vld [vmem:[%s514_s30 + $0x21] sm:$0xff]  ;;  %v412_v60 = vld [vmem:[%s514_s30 + $0x29] sm:$0x3f] }
  0x18   : >> { %v190_v22 = vmul.f32 %v189_v15, %v184_v9  ;;  %v200_v23 = vmul.f32 %v199_v16, %v194_v10  ;;  %v210_v24 = vmul.f32 %v209_v17, %v204_v11  ;;  %v223_v31 = vmul.f32 %v402_v18, %v222_v19  ;;  %v407_v48 = vld [vmem:[%s514_s30 + $0x1a] sm:$0x3f]  ;;  %v413_v55 = vld [vmem:[%s514_s30 + $0x22] sm:$0xff]  ;;  %v414_v4 = vld [vmem:[%s514_s30 + $0x2a] sm:$0x3f] }
  0x19   : >> { %v191_v33 = vmul.f32 %v189_v15, %v185_v21  ;;  %v201_v36 = vmul.f32 %v199_v16, %v195_v26  ;;  %v211_v37 = vmul.f32 %v209_v17, %v205_v27  ;;  %v233_v39 = vmul.f32 %v404_v28, %v232_v25  ;;  %v288_v11 = vld [vmem:[#allocation2] sm:$0xff]  ;;  %v294_v15 = vld [vmem:[#allocation3] sm:$0xff]  ;;  %v289_v17 = vld [vmem:[#allocation2 + $0x8] sm:$0x3f] }
  0x1a   : >> { %v202_v30 = vadd.f32 %v200_v23, %v190_v22  ;;  %v224_v44 = vmul.f32 %v403_v34, %v222_v19  ;;  %v243_v46 = vmul.f32 %v406_v35, %v242_v29  ;;  %v234_v51 = vmul.f32 %v405_v41, %v232_v25  ;;  %v295_v21 = vld [vmem:[#allocation3 + $0x8] sm:$0x3f] }
  0x1b   : >> { %v203_v43 = vadd.f32 %v201_v36, %v191_v33  ;;  %v256_v53 = vmul.f32 %v409_v42, %v255_v40  ;;  %v244_v57 = vmul.f32 %v407_v48, %v242_v29  ;;  %v266_v59 = vmul.f32 %v411_v49, %v265_v47 }
  0x1c   : >> { %v212_v38 = vadd.f32 %v210_v24, %v202_v30  ;;  %v257_v62 = vmul.f32 %v410_v54, %v255_v40  ;;  %v276_v3 = vmul.f32 %v490_v1, %v413_v55  ;;  %v267_v6 = vmul.f32 %v412_v60, %v265_v47 }
  0x1d   : >> { %v213_v50 = vadd.f32 %v211_v37, %v203_v43  ;;  %v277_v9 = vmul.f32 %v490_v1, %v414_v4 }
  0x1e   : >> { %v225_v45 = vadd.f32 %v223_v31, %v212_v38 }
  0x1f   : >> { %v226_v56 = vadd.f32 %v224_v44, %v213_v50 }
  0x20   : >> { %v235_v52 = vadd.f32 %v233_v39, %v225_v45 }
  0x21   : >> { %v236_v61 = vadd.f32 %v234_v51, %v226_v56 }
  0x22   : >> { %v245_v58 = vadd.f32 %v243_v46, %v235_v52 }
  0x23   : >> { %v246_v5 = vadd.f32 %v244_v57, %v236_v61 }
  0x24   : >> { %v258_v63 = vadd.f32 %v256_v53, %v245_v58 }
  0x25   : >> { %v259_v8 = vadd.f32 %v257_v62, %v246_v5 }
  0x26   : >> { %v268_v7 = vadd.f32 %v266_v59, %v258_v63 }
  0x27   : >> { %v269_v12 = vadd.f32 %v267_v6, %v259_v8 }
  0x28   : >> { %v278_v10 = vadd.f32 %v276_v3, %v268_v7 }
  0x29   : >> { %v279_v14 = vadd.f32 %v277_v9, %v269_v12 }
  0x2a   : >> { %v286_v13 = vadd.f32 %v495_v2, %v278_v10 }
  0x2b   : >> { %v287_v19 = vadd.f32 %v495_v2, %v279_v14  ;;  %180 = sbr.rel (!%p178_p4) target bundleno = 16 (0x10), region = 72 }
  0x2c   : >> { %v290_v16 = vadd.f32 %v288_v11, %v286_v13  ;;  %v296_v18 = vmul.f32 %v286_v13, %v286_v13 }
  0x2d   : >> { %v291_v22 = vadd.f32 %v289_v17, %v287_v19  ;;  %v297_v23 = vmul.f32 %v287_v19, %v287_v19 }
  0x2e   : >> { %292 = vst [vmem:[#allocation2] sm:$0xff] %v290_v16  ;;  %v298_v20 = vadd.f32 %v296_v18, %v294_v15 }
  0x2f   : >> { %293 = vst [vmem:[#allocation2 + $0x8] sm:$0x3f] %v291_v22  ;;  %v299_v24 = vadd.f32 %v297_v23, %v295_v21 }
  0x30   : >> { %300 = vst [vmem:[#allocation3] sm:$0xff] %v298_v20 }
  0x31   : >> { %301 = vst [vmem:[#allocation3 + $0x8] sm:$0x3f] %v299_v24 }
  0x35   : > { %v302_v25 = vld [vmem:[#allocation2] sm:$0xff] }
  0x36   : > { %v303_v26 = vld [vmem:[#allocation2 + $0x8] sm:$0x3f] }
  0x37   : > { %v313_v27 = vld [vmem:[#allocation3] sm:$0xff]  ;;  %v305_v28 = vsel %vm304_vm0, %v303_v26, 0.0 }
  0x38   : > { %v314_v29 = vld [vmem:[#allocation3 + $0x8] sm:$0x3f]  ;;  %v306_v30 = vadd.f32 %v305_v28, %v302_v25 }
  0x39   : > { %v315_v31 = vsel %vm304_vm0, %v314_v29, 0.0 }
  0x3a   : > { %v316_v32 = vadd.f32 %v315_v31, %v313_v27  ;;  %v307_v33 = vrot.slane %v306_v30, 4 }
  0x3c   : > { %v317_v34 = vrot.slane %v316_v32, 4  ;;  %v308_v35 = vadd.f32 %v307_v33, %v306_v30 }
  0x3e   : > { %v318_v36 = vadd.f32 %v317_v34, %v316_v32  ;;  %v309_v37 = vrot.slane %v308_v35, 2 }
  0x40   : > { %v319_v38 = vrot.slane %v318_v36, 2  ;;  %v310_v39 = vadd.f32 %v309_v37, %v308_v35 }
  0x42   : > { %v320_v40 = vadd.f32 %v319_v38, %v318_v36  ;;  %v311_v41 = vrot.slane %v310_v39, 1 }
  0x44   : > { %v321_v42 = vrot.slane %v320_v40, 1  ;;  %v312_v0 = vadd.f32 %v311_v41, %v310_v39 }
  0x46   : > { %v322_v1 = vadd.f32 %v321_v42, %v320_v40 }
  0x48   : > { %v324_v2 = vsel %vm323_vm1, %v312_v0, %v322_v1 }
  0x49   : > { %325 = vst [vmem:[%s505_s27] sm:$0x3] %v324_v2 }
  0x4a PF: > { %s13_s12 = sadd.s32 1, %s447_s12  }
  0x4b   : > { %p10_p5 = scmp.ge.s32.totalorder %s13_s12, 4  }
  0x4d   :  { %12 = sbr.rel (!%p10_p5) target bundleno = 1 (0x1), region = 83 }

// kernel: depthwise_conv_block_nhwc.4
= control target key start
LH: loop header
LB: loop body
LE: loop exit
PB: predicated region body
PF: predicated region fallthrough
CT: control target
= control target key end

     0   :  { %s884_s27 = smov 0   ;;  %s1090_s0 = inlined_call_operand.vmem [shape: f32[2,16,16,128], index: 0, kind: input, shape index: {}]   ;;  %s1091_s1 = inlined_call_operand.vmem [shape: f32[9,128], index: 1, kind: input, shape index: {}]   ;;  %s1092_s2 = inlined_call_operand.vmem [shape: f32[1,128], index: 2, kind: input, shape index: {}]   ;;  %s1093_s3 = inlined_call_operand.vmem [shape: f32[1,128], index: 3, kind: input, shape index: {}]   ;;  %s1094_s4 = inlined_call_operand.vmem [shape: f32[1,128], index: 4, kind: input, shape index: {}]   ;;  %s1095_s5 = inlined_call_operand.vmem [shape: f32[128,128], index: 5, kind: input, shape index: {}]   ;;  %s1096_s6 = inlined_call_operand.vmem [shape: f32[1,128], index: 6, kind: input, shape index: {}]   ;;  %s1097_s7 = inlined_call_operand.vmem [shape: f32[2,14,14,128], index: 7, kind: output, shape index: {0}]   ;;  %s1098_s8 = inlined_call_operand.vmem [shape: f32[2,2,128], index: 8, kind: output, shape index: {1}]  }
   0x1 LB: > { %s690_s28 = sadd.s32 4294967295, %s832_s27   ;;  %p694_p0 = scmp.ge.s32.totalorder %s832_s27, 1  ;;  %s832_s27 = sphi %s884_s27, %s19_s27  }
   0x2   : > { %p265_p1 = scmp.lt.s32.totalorder %s832_s27, 3 }
   0x4   : > { %p266_p2 = pnand %p694_p0, %p265_p1 }
   0x5   : > { %p303_p3 = scmp.lt.s32.totalorder (!%p266_p2), %s690_s28, 1  ;;  %v895_v0 = vld [vmem:[%s1091_s1] sm:$0xff] (!%p266_p2)  ;;  %v900_v1 = vld [vmem:[%s1091_s1 + $0x8] ss:$0 sm:$0xff] (!%p266_p2)  ;;  %v927_v8 = vld [vmem:[%s1095_s5 + $0x10] sm:$0xff] (!%p266_p2)  ;;  %v838_v10 = vmov (!%p266_p2), 0.0  }
   0x6   : > { %269 = sbr.rel (%p266_p2) target bundleno = 295 (0x127), region = 48  ;;  %v905_v2 = vld [vmem:[%s1093_s3] sm:$0x1] (!%p266_p2)  ;;  %v922_v7 = vld [vmem:[%s1095_s5 + $0x8] sm:$0xff] (!%p266_p2)  ;;  %v932_v9 = vld [vmem:[%s1095_s5 + $0x18] sm:$0xff] (!%p266_p2)  ;;  %341 = vst [vmem:[#allocation2] sm:$0xff] (!%p266_p2), %v838_v10 }
   0x7   : > { %v320_v3 = vld [vmem:[%s1094_s4] sm:$0x1] (!%p266_p2)  ;;  %342 = vst [vmem:[#allocation2 + $0x8] sm:$0x3f] (!%p266_p2), %v838_v10  ;;  %343 = vst [vmem:[#allocation3] sm:$0xff] (!%p266_p2), %v838_v10  ;;  %v942_v12 = vld [vmem:[%s1095_s5 + $0x28] sm:$0xff] (!%p266_p2) }
   0x8   : > { %v321_v4 = vld [vmem:[%s1092_s2] sm:$0x1] (!%p266_p2)  ;;  %344 = vst [vmem:[#allocation3 + $0x8] sm:$0x3f] (!%p266_p2), %v838_v10  ;;  %v947_v13 = vld [vmem:[%s1095_s5 + $0x30] sm:$0xff] (!%p266_p2)  ;;  %v954_v15 = vld [vmem:[%s1095_s5 + $0x38] sm:$0xff] (!%p266_p2) }
   0x9   : > { %v916_v5 = vld [vmem:[%s1095_s5] sm:$0xff] (!%p266_p2)  ;;  %v322_v6 = vmul.f32 (!%p266_p2), %v321_v4, %v905_v2  ;;  %v964_v17 = vld [vmem:[%s1095_s5 + $0x48] sm:$0xff] (!%p266_p2)  ;;  %v974_v18 = vld [vmem:[%s1095_s5 + $0x50] sm:$0xff] (!%p266_p2) }
   0xa   : > { %v937_v11 = vld [vmem:[%s1095_s5 + $0x20] sm:$0xff] (!%p266_p2)  ;;  %v979_v19 = vld [vmem:[%s1095_s5 + $0x58] sm:$0xff] (!%p266_p2)  ;;  %v999_v21 = vld [vmem:[%s1095_s5 + $0x68] sm:$0xff] (!%p266_p2) }
   0xb   : > { %v949_v14 = vadd.f32 (!%p266_p2), %v322_v6, %v320_v3  ;;  %v959_v16 = vld [vmem:[%s1095_s5 + $0x40] sm:$0xff] (!%p266_p2)  ;;  %v1004_v22 = vld [vmem:[%s1095_s5 + $0x70] sm:$0xff] (!%p266_p2)  ;;  %v1009_v23 = vld [vmem:[%s1095_s5 + $0x78] sm:$0xff] (!%p266_p2) }
   0xc   : > { %v984_v20 = vld [vmem:[%s1095_s5 + $0x60] sm:$0xff] (!%p266_p2) }
   0xd   : > { %s1100_s28 = smov (!%p303_p3, %s690_s28), 1  ;;  %v1014_v24 = vld [vmem:[%s1096_s6] ss:$0 sm:$0xff] }
   0xe   : > { %s718_s11 = sshll.u32 %s1100_s28, 8  ;;  %s804_s12 = smul.u32 224, %s1100_s28 }
   0xf   : > { %s969_s21 = scalar_lea.vmem %s1090_s0, %s718_s11  ;;  %s698_s22 = sshll.u32 %s1100_s28, 1 }
  0x10   : > { %s989_s11 = scalar_lea.vmem %s1097_s7, %s804_s12  ;;  %s994_s14 = scalar_lea.vmem %s1098_s8, %s698_s22 }
  0x11   : > { %s1016_s22 = smov 0  }
  0x12 LB: >> { %v772_v25 = vpack.c.bf16 %v922_v7, %v916_v5  ;;  %v776_v26 = vpack.c.bf16 %v932_v9, %v927_v8  ;;  %s699_s24 = sshll.u32 %s836_s22, 4  ;;  %v355_v27 = vlaneseq  ;;  %v780_v28 = vpack.c.bf16 %v942_v12, %v937_v11  ;;  %s350_s22 = sadd.s32 1, %s836_s22   ;;  %s836_s22 = sphi %s1016_s22, %s350_s22  }
  0x13   : >> { %s1029_s25 = scalar_lea.vmem %s969_s21, %s699_s24  ;;  %v784_v35 = vpack.c.bf16 %v954_v15, %v947_v13  ;;  %v788_v55 = vpack.c.bf16 %v964_v17, %v959_v16  ;;  %s548_s26 = scalar_lea.vmem %s989_s11, %s699_s24 }
  0x14   : >> { %773 = vmatprep.subr.bf16.mxu0 %v772_v25  ;;  %v356_v29 = vshrl.u32 %v355_v27, 7  ;;  %v354_v30 = vld [vmem:[%s1029_s25 + $0x8] sm:$0x3f]  ;;  %v353_v36 = vld [vmem:[%s1029_s25] sm:$0xff]  ;;  %v701_v47 = vld [vmem:[%s1029_s25 + $0x10] sm:$0xff]  ;;  %p347_p4 = scmp.ge.s32.totalorder %s350_s22, 14  }
  0x15   : >> { %775 = vmatpush3.bf16.msra.mxu0 %v772_v25  ;;  %v363_v37 = vld [vmem:[%s1029_s25 + $0x1] sm:$0xff]  ;;  %v364_v38 = vld [vmem:[%s1029_s25 + $0x9] sm:$0x3f]  ;;  %v703_v54 = vld [vmem:[%s1029_s25 + $0x11] sm:$0xff]  ;;  %vm567_vm0 = vcmask (%p347_p4), 1045504   ;;  %vm586_vm1 = vcmask (%p347_p4), 1040384  }
  0x16   : >> { %777 = vmatprep.subr.bf16.mxu0 %v776_v26  ;;  %v1034_v31 = vsub.s32 0, %v356_v29  ;;  %v367_v32 = vsub.s32 1, %v356_v29  ;;  %v377_v33 = vsub.s32 2, %v356_v29  ;;  %v390_v34 = vsub.s32 3, %v356_v29  ;;  %v373_v43 = vld [vmem:[%s1029_s25 + $0x2] sm:$0xff]  ;;  %v705_v3 = vld [vmem:[%s1029_s25 + $0x12] sm:$0xff] }
  0x17   : >> { %v400_v39 = vsub.s32 4, %v356_v29  ;;  %v410_v40 = vsub.s32 5, %v356_v29  ;;  %v374_v44 = vld [vmem:[%s1029_s25 + $0xa] sm:$0x3f]  ;;  %v423_v49 = vsub.s32 6, %v356_v29  ;;  %v433_v4 = vsub.s32 7, %v356_v29 }
  0x18   : >> { %v358_v41 = vrot.slane %v895_v0, %v1034_v31  ;;  %v368_v42 = vrot.slane %v895_v0, %v367_v32  ;;  %v378_v45 = vrot.slane %v895_v0, %v377_v33  ;;  %v391_v46 = vrot.slane %v895_v0, %v390_v34  ;;  %v702_v59 = vld [vmem:[%s1029_s25 + $0x18] sm:$0x3f]  ;;  %v708_v34 = vld [vmem:[%s1029_s25 + $0x20] sm:$0xff] }
  0x19   : >> { %779 = vmatpush3.bf16.msra.mxu0 %v776_v26  ;;  %v401_v48 = vrot.slane %v895_v0, %v400_v39  ;;  %v411_v58 = vrot.slane %v895_v0, %v410_v40  ;;  %v704_v60 = vld [vmem:[%s1029_s25 + $0x19] sm:$0x3f]  ;;  %v424_v10 = vrot.slane %v895_v0, %v423_v49  ;;  %v792_v32 = vpack.c.bf16 %v979_v19, %v974_v18  ;;  %v710_v40 = vld [vmem:[%s1029_s25 + $0x21] sm:$0xff] }
  0x1a   : >> { %781 = vmatprep.subr.bf16.mxu0 %v780_v28  ;;  %v359_v50 = vmul.f32 %v358_v41, %v353_v36  ;;  %v360_v51 = vmul.f32 %v358_v41, %v354_v30  ;;  %v369_v52 = vmul.f32 %v368_v42, %v363_v37  ;;  %v370_v53 = vmul.f32 %v368_v42, %v364_v38  ;;  %v706_v25 = vld [vmem:[%s1029_s25 + $0x1a] sm:$0x3f]  ;;  %v709_v36 = vld [vmem:[%s1029_s25 + $0x28] sm:$0x3f] }
  0x1b   : >> { %v379_v56 = vmul.f32 %v378_v45, %v373_v43  ;;  %v380_v57 = vmul.f32 %v378_v45, %v374_v44  ;;  %v392_v63 = vmul.f32 %v701_v47, %v391_v46  ;;  %v402_v6 = vmul.f32 %v703_v54, %v401_v48  ;;  %v711_v41 = vld [vmem:[%s1029_s25 + $0x29] sm:$0x3f] }
  0x1c   : >> { %v371_v61 = vadd.f32 %v369_v52, %v359_v50  ;;  %v372_v62 = vadd.f32 %v370_v53, %v360_v51  ;;  %v403_v30 = vmul.f32 %v704_v60, %v401_v48  ;;  %v412_v33 = vmul.f32 %v705_v3, %v411_v58  ;;  %v713_v47 = vld [vmem:[%s1029_s25 + $0x2a] sm:$0x3f] }
  0x1d   : >> { %783 = vmatpush3.bf16.msra.mxu0 %v780_v28  ;;  %v393_v28 = vmul.f32 %v702_v59, %v391_v46  ;;  %v434_v37 = vrot.slane %v895_v0, %v433_v4  ;;  %v413_v39 = vmul.f32 %v706_v25, %v411_v58  ;;  %v425_v43 = vmul.f32 %v708_v34, %v424_v10  ;;  %v712_v46 = vld [vmem:[%s1029_s25 + $0x22] sm:$0xff] }
  0x1e   : >> { %785 = vmatprep.subr.bf16.mxu0 %v784_v35  ;;  %v381_v26 = vadd.f32 %v379_v56, %v371_v61  ;;  %v382_v27 = vadd.f32 %v380_v57, %v372_v62  ;;  %v796_v45 = vpack.c.bf16 %v999_v21, %v984_v20  ;;  %v445_v53 = vmul.f32 %v900_v1, %v712_v46 }
  0x1f   : >> { %v435_v49 = vmul.f32 %v710_v40, %v434_v37  ;;  %v436_v51 = vmul.f32 %v711_v41, %v434_v37  ;;  %v446_v56 = vmul.f32 %v900_v1, %v713_v47  ;;  %v453_v58 = vrot.slane %v905_v2, %v1034_v31 }
  0x20   : >> { %v394_v29 = vadd.f32 %v392_v63, %v381_v26  ;;  %v395_v38 = vadd.f32 %v393_v28, %v382_v27  ;;  %v461_v61 = vrot.slane %v949_v14, %v1034_v31  ;;  %v552_v27 = vld [vmem:[#allocation2 + $0x8] sm:$0x3f]  ;;  %v551_v31 = vld [vmem:[#allocation2] sm:$0xff] }
  0x21   : >> { %787 = vmatpush3.bf16.msra.mxu0 %v784_v35  ;;  %v426_v35 = vmul.f32 %v709_v36, %v424_v10 }
  0x22   : >> { %789 = vmatprep.subr.bf16.mxu0 %v788_v55  ;;  %v404_v42 = vadd.f32 %v402_v6, %v394_v29  ;;  %v405_v44 = vadd.f32 %v403_v30, %v395_v38  ;;  %v557_v29 = vld [vmem:[#allocation3] sm:$0xff] }
  0x24   : >> { %v414_v48 = vadd.f32 %v412_v33, %v404_v42  ;;  %v415_v50 = vadd.f32 %v413_v39, %v405_v44 }
  0x25   : >> { %791 = vmatpush3.bf16.msra.mxu0 %v788_v55  ;;  %v800_v55 = vpack.c.bf16 %v1009_v23, %v1004_v22 }
  0x26   : >> { %793 = vmatprep.subr.bf16.mxu0 %v792_v32  ;;  %v427_v52 = vadd.f32 %v425_v43, %v414_v48  ;;  %v428_v54 = vadd.f32 %v426_v35, %v415_v50 }
  0x28   : >> { %v437_v57 = vadd.f32 %v435_v49, %v427_v52  ;;  %v438_v59 = vadd.f32 %v436_v51, %v428_v54 }
  0x29   : >> { %795 = vmatpush3.bf16.msra.mxu0 %v792_v32  ;;  %v558_v32 = vld [vmem:[#allocation3 + $0x8] sm:$0x3f] }
  0x2a   : >> { %797 = vmatprep.subr.bf16.mxu0 %v796_v45  ;;  %v447_v60 = vadd.f32 %v445_v53, %v437_v57  ;;  %v448_v62 = vadd.f32 %v446_v56, %v438_v59 }
  0x2c   : >> { %v455_v63 = vmul.f32 %v453_v58, %v447_v60  ;;  %v456_v3 = vmul.f32 %v453_v58, %v448_v62 }
  0x2d   : >> { %799 = vmatpush3.bf16.msra.mxu0 %v796_v45 }
  0x2e   : >> { %801 = vmatprep.subr.bf16.mxu0 %v800_v55  ;;  %v463_v4 = vadd.f32 %v461_v61, %v455_v63  ;;  %v464_v6 = vadd.f32 %v461_v61, %v456_v3 }
  0x30   : >> { %v465_v10 = vmax.f32 %v463_v4, 0.0  ;;  %v466_v25 = vmax.f32 %v464_v6, 0.0 }
  0x31   : >> { %803 = vmatpush3.bf16.msra.mxu0 %v800_v55 }
  0x32   : >> { %769 = vmatprep.mubr.f32.mxu0 %v465_v10 }
  0x34   : >> { %770 = vmatmul.mubr.f32.vlgmr.msra.gmra.mrb[0].mxu0 %v466_v25 }
 0x107   : >> { %v771_v26 = vpop.f32.mrb[0].mxu0 }
 0x108   : >> { %v545_v28 = vadd.f32 %v771_v26, %v1014_v24  ;;  %v539_v30 = vpop.f32.mrb[1].mxu0 }
 0x109   : >> { %v540_v33 = vadd.f32 %v1014_v24, %v539_v30  ;;  %349 = sbr.rel (!%p347_p4) target bundleno = 18 (0x12), region = 101 }
 0x10a   : >> { %550 = vst [vmem:[%s548_s26 + $0x8] sm:$0x3f] %v545_v28  ;;  %v554_v34 = vadd.f32 %v552_v27, %v545_v28  ;;  %v560_v36 = vmul.f32 %v545_v28, %v545_v28 }
 0x10b   : >> { %549 = vst [vmem:[%s548_s26] sm:$0xff] %v540_v33  ;;  %v553_v37 = vadd.f32 %v551_v31, %v540_v33  ;;  %v559_v38 = vmul.f32 %v540_v33, %v540_v33 }
 0x10c   : >> { %556 = vst [vmem:[#allocation2 + $0x8] sm:$0x3f] %v554_v34  ;;  %v562_v39 = vadd.f32 %v560_v36, %v558_v32 }
 0x10d   : >> { %555 = vst [vmem:[#allocation2] sm:$0xff] %v553_v37  ;;  %v561_v40 = vadd.f32 %v559_v38, %v557_v29 }
 0x10e   : >> { %564 = vst [vmem:[#allocation3 + $0x8] sm:$0x3f] %v562_v39 }
 0x10f   : >> { %563 = vst [vmem:[#allocation3] sm:$0xff] %v561_v40 }
 0x113   : > { %v566_v42 = vld [vmem:[#allocation2 + $0x8] sm:$0x3f] }
 0x114   : > { %v565_v41 = vld [vmem:[#allocation2] sm:$0xff]  ;;  %v568_v44 = vsel %vm567_vm0, %v566_v42, 0.0 }
 0x115   : > { %v577_v35 = vld [vmem:[#allocation3 + $0x8] sm:$0x3f]  ;;  %v569_v45 = vadd.f32 %v568_v44, %v565_v41 }
 0x116   : > { %v576_v43 = vld [vmem:[#allocation3] sm:$0xff]  ;;  %v578_v46 = vsel %vm567_vm0, %v577_v35, 0.0 }
 0x117   : > { %v579_v47 = vadd.f32 %v578_v46, %v576_v43  ;;  %v570_v48 = vrot.slane %v569_v45, 4 }
 0x119   : > { %v580_v49 = vrot.slane %v579_v47, 4  ;;  %v571_v50 = vadd.f32 %v570_v48, %v569_v45 }
 0x11b   : > { %v581_v51 = vadd.f32 %v580_v49, %v579_v47  ;;  %v572_v52 = vrot.slane %v571_v50, 2 }
 0x11d   : > { %v582_v53 = vrot.slane %v581_v51, 2  ;;  %v573_v54 = vadd.f32 %v572_v52, %v571_v50 }
 0x11f   : > { %v583_v56 = vadd.f32 %v582_v53, %v581_v51  ;;  %v574_v55 = vrot.slane %v573_v54, 1 }
 0x121   : > { %v584_v57 = vrot.slane %v583_v56, 1  ;;  %v575_v0 = vadd.f32 %v574_v55, %v573_v54 }
 0x123   : > { %v585_v1 = vadd.f32 %v584_v57, %v583_v56 }
 0x125   : > { %v587_v2 = vsel %vm586_vm1, %v575_v0, %v585_v1 }
 0x126   : > { %588 = vst [vmem:[%s994_s14] sm:$0x3] %v587_v2 }
 0x127 PF: > { %s19_s27 = sadd.s32 1, %s832_s27  }
 0x128   : > { %p16_p5 = scmp.ge.s32.totalorder %s19_s27, 4  }
 0x12a   :  { %18 = sbr.rel (!%p16_p5) target bundleno = 1 (0x1), region = 112 }

</bundles_post_ra>
